<compile_context>
chip_gen: v5e
topology: v5e:2x2
jax: 0.10.0
libtpu: 0.0.40
codegen_flags: <defaults>
</compile_context>

<pallas_src>
import functools
import math

import jax
import jax.numpy as jnp
from jax.experimental import pallas as pl
from jax.experimental.pallas import tpu as pltpu


def _round_up(v, m):
    return (v + m - 1) // m * m


# ----------------------------------------------------------------------------
# 1) Multi-head self-attention + residual, one grid step per batch element.
# ----------------------------------------------------------------------------
def _mha_residual_kernel(h_ref, mask_ref, wq_ref, wk_ref, wv_ref, wo_ref, o_ref):
    # h_ref: (1, S, E); mask_ref: (1, S, S) int32; wq/wk/wv: (H, E, D); wo: (H, D, E)
    x = h_ref[0]                      # (S, E)
    mask = mask_ref[0] != 0           # (S, S) bool, True => attention not allowed
    H = wq_ref.shape[0]
    D = wq_ref.shape[2]
    norm_factor = 1.0 / math.sqrt(D)
    neg_inf = jnp.float32(-1.0e10)

    acc = None
    # TODO(synk): per-head static loop over a full (S,E) block; flash-style q/k tiling
    # would be needed for very large graph_size.
    for hd in range(H):
        q = jnp.dot(x, wq_ref[hd], preferred_element_type=jnp.float32)   # (S, D)
        k = jnp.dot(x, wk_ref[hd], preferred_element_type=jnp.float32)   # (S, D)
        v = jnp.dot(x, wv_ref[hd], preferred_element_type=jnp.float32)   # (S, D)

        scores = norm_factor * jax.lax.dot_general(
            q, k, (((1,), (1,)), ((), ())), preferred_element_type=jnp.float32)  # (S, S)
        scores = jnp.where(mask, neg_inf, scores)

        m = jnp.max(scores, axis=-1, keepdims=True)
        p = jnp.exp(scores - m)
        attn = p / jnp.sum(p, axis=-1, keepdims=True)

        head = jnp.dot(attn, v, preferred_element_type=jnp.float32)       # (S, D)
        contrib = jnp.dot(head, wo_ref[hd], preferred_element_type=jnp.float32)  # (S, E)
        acc = contrib if acc is None else acc + contrib

    o_ref[0] = (x.astype(jnp.float32) + acc).astype(o_ref.dtype)


def mha_residual(h, mask, wq, wk, wv, wo):
    B, S, E = h.shape
    H, _, D = wq.shape
    mask_i = mask.astype(jnp.int32)

    isz = jnp.dtype(h.dtype).itemsize
    flops = B * H * (2 * S * E * D * 3 + 2 * S * S * D * 2 + 2 * S * D * E)
    transcendentals = B * H * S * S
    bytes_accessed = isz * (2 * B * S * E) + 4 * (B * S * S) + isz * (3 * H * E * D + H * D * E)

    return pl.pallas_call(
        _mha_residual_kernel,
        out_shape=jax.ShapeDtypeStruct((B, S, E), h.dtype),
        grid_spec=pltpu.PrefetchScalarGridSpec(
            num_scalar_prefetch=0,
            grid=(B,),
            in_specs=[
                pl.BlockSpec((1, S, E), lambda b: (b, 0, 0)),
                pl.BlockSpec((1, S, S), lambda b: (b, 0, 0)),
                pl.BlockSpec((H, E, D), lambda b: (0, 0, 0)),
                pl.BlockSpec((H, E, D), lambda b: (0, 0, 0)),
                pl.BlockSpec((H, E, D), lambda b: (0, 0, 0)),
                pl.BlockSpec((H, D, E), lambda b: (0, 0, 0)),
            ],
            out_specs=pl.BlockSpec((1, S, E), lambda b: (b, 0, 0)),
        ),
        compiler_params=pltpu.CompilerParams(
            dimension_semantics=("parallel",),
            vmem_limit_bytes=64 * 1024 * 1024),
        cost_estimate=pl.CostEstimate(flops=int(flops),
                                      transcendentals=int(transcendentals),
                                      bytes_accessed=int(bytes_accessed)),
    )(h, mask_i, wq, wk, wv, wo)


# ----------------------------------------------------------------------------
# 2) BatchNorm1d batch statistics: row-tiled reduction -> (2, E) [mean; inv_std].
# ----------------------------------------------------------------------------
def _bn_stats_kernel(x_ref, o_ref, sum_ref, sq_ref, *, n_valid, tile_rows):
    i = pl.program_id(0)

    @pl.when(i == 0)
    def _():
        sum_ref[...] = jnp.zeros_like(sum_ref)
        sq_ref[...] = jnp.zeros_like(sq_ref)

    x = x_ref[...].astype(jnp.float32)                                    # (TM, E)
    row = i * tile_rows + jax.lax.broadcasted_iota(jnp.int32, x.shape, 0)
    xv = jnp.where(row < n_valid, x, 0.0)                                 # mask padded rows
    sum_ref[...] += jnp.sum(xv, axis=0, keepdims=True)
    sq_ref[...] += jnp.sum(xv * xv, axis=0, keepdims=True)

    @pl.when(i == pl.num_programs(0) - 1)
    def _():
        inv_n = jnp.float32(1.0 / n_valid)
        mean = sum_ref[...] * inv_n
        var = sq_ref[...] * inv_n - mean * mean                           # biased, like torch BN
        inv_std = jax.lax.rsqrt(var + 1e-5)
        o_ref[0:1, :] = mean
        o_ref[1:2, :] = inv_std


def bn_stats(x2p, n_valid, *, tile_rows):
    Rp, E = x2p.shape
    assert Rp % tile_rows == 0
    grid = (Rp // tile_rows,)
    kernel = functools.partial(_bn_stats_kernel, n_valid=n_valid, tile_rows=tile_rows)

    return pl.pallas_call(
        kernel,
        out_shape=jax.ShapeDtypeStruct((2, E), jnp.float32),
        grid_spec=pltpu.PrefetchScalarGridSpec(
            num_scalar_prefetch=0,
            grid=grid,
            in_specs=[pl.BlockSpec((tile_rows, E), lambda i: (i, 0))],
            out_specs=pl.BlockSpec((2, E), lambda i: (0, 0)),
            scratch_shapes=[pltpu.VMEM((1, E), jnp.float32),
                            pltpu.VMEM((1, E), jnp.float32)],
        ),
        compiler_params=pltpu.CompilerParams(
            dimension_semantics=("arbitrary",),
            vmem_limit_bytes=32 * 1024 * 1024),
    )(x2p)


# ----------------------------------------------------------------------------
# 3) Fused [BatchNorm1 apply + position-wise FFN + residual]:
#    row tiles (parallel) x F-reduction tiles (arbitrary).
# ----------------------------------------------------------------------------
def _bn_ffn_residual_kernel(x_ref, stats_ref, g_ref, bta_ref, w1_ref, b1_ref,
                            w2_ref, b2_ref, o_ref, h2_ref, acc_ref):
    k = pl.program_id(1)

    @pl.when(k == 0)
    def _():
        x = x_ref[...].astype(jnp.float32)                # (TM, E) = h1 tile
        mean = stats_ref[0:1, :]
        inv = stats_ref[1:2, :]
        h2_ref[...] = (x - mean) * inv * g_ref[...] + bta_ref[...]   # BN1 applied once
        acc_ref[...] = jnp.zeros_like(acc_ref)

    h2 = h2_ref[...]                                                  # (TM, E)
    hdn = jnp.dot(h2, w1_ref[...], preferred_element_type=jnp.float32) + b1_ref[...]
    hdn = jnp.maximum(hdn, 0.0)                                       # ReLU (per F-tile, exact)
    acc_ref[...] += jnp.dot(hdn.astype(w2_ref.dtype), w2_ref[...],
                            preferred_element_type=jnp.float32)

    @pl.when(k == pl.num_programs(1) - 1)
    def _():
        o_ref[...] = (h2_ref[...] + acc_ref[...] + b2_ref[...]).astype(o_ref.dtype)


def bn_ffn_residual(x2p, stats, gamma, beta, w1, b1, w2, b2, *, tile_rows, tile_f=512):
    Rp, E = x2p.shape
    Fd = w1.shape[1]
    assert Rp % tile_rows == 0

    # Hidden-dim (reduction) tiling: pad F with zeros if needed (exact, zero contribution).
    tile_f = min(tile_f, _round_up(Fd, 128))
    Fp = _round_up(Fd, tile_f)
    if Fp != Fd:
        w1 = jnp.pad(w1, ((0, 0), (0, Fp - Fd)))
        b1 = jnp.pad(b1, ((0, Fp - Fd),))
        w2 = jnp.pad(w2, ((0, Fp - Fd), (0, 0)))

    grid = (Rp // tile_rows, Fp // tile_f)

    isz = jnp.dtype(x2p.dtype).itemsize
    flops = 2 * Rp * E * Fp * 2
    bytes_accessed = isz * (2 * Rp * E) + 4 * (E * Fp + Fp * E + Fp + E + 4 * E)

    return pl.pallas_call(
        _bn_ffn_residual_kernel,
        out_shape=jax.ShapeDtypeStruct((Rp, E), x2p.dtype),
        grid_spec=pltpu.PrefetchScalarGridSpec(
            num_scalar_prefetch=0,
            grid=grid,
            in_specs=[
                pl.BlockSpec((tile_rows, E), lambda i, k: (i, 0)),
                pl.BlockSpec((2, E), lambda i, k: (0, 0)),
                pl.BlockSpec((1, E), lambda i, k: (0, 0)),
                pl.BlockSpec((1, E), lambda i, k: (0, 0)),
                pl.BlockSpec((E, tile_f), lambda i, k: (0, k)),
                pl.BlockSpec((1, tile_f), lambda i, k: (0, k)),
                pl.BlockSpec((tile_f, E), lambda i, k: (k, 0)),
                pl.BlockSpec((1, E), lambda i, k: (0, 0)),
            ],
            out_specs=pl.BlockSpec((tile_rows, E), lambda i, k: (i, 0)),
            scratch_shapes=[pltpu.VMEM((tile_rows, E), jnp.float32),   # BN1(x) tile
                            pltpu.VMEM((tile_rows, E), jnp.float32)],  # FFN accumulator
        ),
        compiler_params=pltpu.CompilerParams(
            dimension_semantics=("parallel", "arbitrary"),
            vmem_limit_bytes=32 * 1024 * 1024),
        cost_estimate=pl.CostEstimate(flops=int(flops), transcendentals=0,
                                      bytes_accessed=int(bytes_accessed)),
    )(x2p, stats, gamma.reshape(1, E), beta.reshape(1, E),
      w1, b1.reshape(1, -1), w2, b2.reshape(1, E))


# ----------------------------------------------------------------------------
# 4) BatchNorm apply (normalize + affine) with precomputed stats, row-tiled.
# ----------------------------------------------------------------------------
def _bn_apply_kernel(x_ref, stats_ref, g_ref, b_ref, o_ref):
    x = x_ref[...].astype(jnp.float32)
    mean = stats_ref[0:1, :]
    inv = stats_ref[1:2, :]
    o_ref[...] = ((x - mean) * inv * g_ref[...] + b_ref[...]).astype(o_ref.dtype)


def bn_apply(x2p, stats, gamma, beta, *, tile_rows):
    Rp, E = x2p.shape
    assert Rp % tile_rows == 0
    grid = (Rp // tile_rows,)

    return pl.pallas_call(
        _bn_apply_kernel,
        out_shape=jax.ShapeDtypeStruct((Rp, E), x2p.dtype),
        grid_spec=pltpu.PrefetchScalarGridSpec(
            num_scalar_prefetch=0,
            grid=grid,
            in_specs=[
                pl.BlockSpec((tile_rows, E), lambda i: (i, 0)),
                pl.BlockSpec((2, E), lambda i: (0, 0)),
                pl.BlockSpec((1, E), lambda i: (0, 0)),
                pl.BlockSpec((1, E), lambda i: (0, 0)),
            ],
            out_specs=pl.BlockSpec((tile_rows, E), lambda i: (i, 0)),
        ),
        compiler_params=pltpu.CompilerParams(
            dimension_semantics=("parallel",),
            vmem_limit_bytes=32 * 1024 * 1024),
    )(x2p, stats, gamma.reshape(1, E), beta.reshape(1, E))


# ----------------------------------------------------------------------------
# Full layer forward + parameter init (mirrors PyTorch module init).
# ----------------------------------------------------------------------------
def mha_layer_forward(h, mask, p, *, tile_rows=256, tile_f=512):
    B, S, E = h.shape
    h1 = mha_residual(h, mask, p["Wq"], p["Wk"], p["Wv"], p["Wo"])

    R = B * S
    tm = min(tile_rows, _round_up(R, 8))           # sublane-aligned row tile
    Rp = _round_up(R, tm)                          # pad so no ragged last tile
    x2 = h1.reshape(R, E)
    if Rp != R:
        x2 = jnp.pad(x2, ((0, Rp - R), (0, 0)))

    stats1 = bn_stats(x2, R, tile_rows=tm)                               # BN1 batch stats
    h3 = bn_ffn_residual(x2, stats1, p["g1"], p["be1"],
                         p["w1"], p["b1"], p["w2"], p["b2"],
                         tile_rows=tm, tile_f=tile_f)                    # BN1 + FFN + residual
    stats2 = bn_stats(h3, R, tile_rows=tm)                               # BN2 batch stats
    h4 = bn_apply(h3, stats2, p["g2"], p["be2"], tile_rows=tm)           # BN2 apply

    if Rp != R:
        h4 = h4[:R]
    return h4.reshape(B, S, E)


def init_params(key, n_heads, embed_dim, ff_dim, dtype=jnp.float32):
    D = embed_dim // n_heads
    ks = jax.random.split(key, 8)
    s_qkv = 1.0 / math.sqrt(D)              # W_query/W_key/W_val: size(-1) = key_dim/val_dim
    s_out = 1.0 / math.sqrt(embed_dim)      # W_out: size(-1) = embed_dim
    Wq = jax.random.uniform(ks[0], (n_heads, embed_dim, D), dtype, -s_qkv, s_qkv)
    Wk = jax.random.uniform(ks[1], (n_heads, embed_dim, D), dtype, -s_qkv, s_qkv)
    Wv = jax.random.uniform(ks[2], (n_heads, embed_dim, D), dtype, -s_qkv, s_qkv)
    Wo = jax.random.uniform(ks[3], (n_heads, D, embed_dim), dtype, -s_out, s_out)
    s_w1 = 1.0 / math.sqrt(embed_dim)
    s_b1 = 1.0 / math.sqrt(ff_dim)
    s_w2 = 1.0 / math.sqrt(ff_dim)
    s_b2 = 1.0 / math.sqrt(embed_dim)
    w1 = jax.random.uniform(ks[4], (embed_dim, ff_dim), dtype, -s_w1, s_w1)   # stored [in, out]
    b1 = jax.random.uniform(ks[5], (ff_dim,), dtype, -s_b1, s_b1)
    w2 = jax.random.uniform(ks[6], (ff_dim, embed_dim), dtype, -s_w2, s_w2)
    b2 = jax.random.uniform(ks[7], (embed_dim,), dtype, -s_b2, s_b2)
    g1 = jnp.ones((embed_dim,), dtype)
    be1 = jnp.zeros((embed_dim,), dtype)
    g2 = jnp.ones((embed_dim,), dtype)
    be2 = jnp.zeros((embed_dim,), dtype)
    return dict(Wq=Wq, Wk=Wk, Wv=Wv, Wo=Wo, g1=g1, be1=be1,
                w1=w1, b1=b1, w2=w2, b2=b2, g2=g2, be2=be2)


# ----------------------------------------------------------------------------
# Pure-JAX reference of the whole layer (for correctness check).
# ----------------------------------------------------------------------------
def reference_forward(h, mask, p):
    hp = jax.lax.Precision.HIGHEST
    D = p["Wq"].shape[-1]
    norm = 1.0 / math.sqrt(D)
    Q = jnp.einsum("bse,hed->hbsd", h, p["Wq"], precision=hp)
    K = jnp.einsum("bse,hed->hbsd", h, p["Wk"], precision=hp)
    V = jnp.einsum("bse,hed->hbsd", h, p["Wv"], precision=hp)
    compat = norm * jnp.einsum("hbqd,hbkd->hbqk", Q, K, precision=hp)
    compat = jnp.where(mask[None].astype(bool), -1.0e10, compat)
    attn = jax.nn.softmax(compat, axis=-1)
    heads = jnp.einsum("hbqk,hbkd->hbqd", attn, V, precision=hp)
    mha = jnp.einsum("hbqd,hde->bqe", heads, p["Wo"], precision=hp)
    h1 = h + mha

    def bn(x, g, b, eps=1e-5):
        x2 = x.reshape(-1, x.shape[-1])
        mu = x2.mean(0)
        var = ((x2 - mu) ** 2).mean(0)
        return (((x2 - mu) / jnp.sqrt(var + eps)) * g + b).reshape(x.shape)

    h2 = bn(h1, p["g1"], p["be1"])
    x2 = h2.reshape(-1, h2.shape[-1])
    ffn = jnp.dot(jnp.maximum(jnp.dot(x2, p["w1"], precision=hp) + p["b1"], 0.0),
                  p["w2"], precision=hp) + p["b2"]
    h3 = h2 + ffn.reshape(h2.shape)
    h4 = bn(h3, p["g2"], p["be2"])
    return h4


if __name__ == "__main__":
    n_heads, embed_dim, ff_dim = 4, 128, 512   # lane-dense (multiples of 128), small
    batch, seq = 2, 8

    key = jax.random.PRNGKey(0)
    kx, km, kp = jax.random.split(key, 3)
    h = jax.random.normal(kx, (batch, seq, embed_dim), jnp.float32)
    mask = (jax.random.uniform(km, (batch, seq, seq)) < 0.2).astype(jnp.int32)
    mask = mask.at[:, :, 0].set(0)   # keep at least one attendable node per query

    params = init_params(kp, n_heads, embed_dim, ff_dim)

    y = mha_layer_forward(h, mask, params)
    y = jax.block_until_ready(y)

    ref = reference_forward(h, mask, params)
    assert y.shape == h.shape
    assert jnp.allclose(y, ref, atol=1e-2, rtol=1e-2), float(jnp.max(jnp.abs(y - ref)))

    print("KERNEL_OK")
</pallas_src>

<mosaic_0001>
module attributes {stable_mosaic.version = 11 : i64} {
  func.func @_mha_residual_kernel(%arg0: i32, %arg1: memref<1x8x128xf32, #tpu.memory_space<vmem>>, %arg2: memref<1x8x8xi32, #tpu.memory_space<vmem>>, %arg3: memref<4x128x32xf32, #tpu.memory_space<vmem>>, %arg4: memref<4x128x32xf32, #tpu.memory_space<vmem>>, %arg5: memref<4x128x32xf32, #tpu.memory_space<vmem>>, %arg6: memref<4x32x128xf32, #tpu.memory_space<vmem>>, %arg7: memref<1x8x128xf32, #tpu.memory_space<vmem>>) attributes {dimension_semantics = [#tpu.dimension_semantics<parallel>], iteration_bounds = array<i64: 2>, scalar_prefetch = 0 : i64, scratch_operands = 0 : i64, tpu.core_type = #tpu.core_type<tc>, window_params = [{transform_indices = @transform_0, window_bounds = array<i64: 1, 8, 128>}, {transform_indices = @transform_1, window_bounds = array<i64: 1, 8, 8>}, {pipeline_mode = #tpu.pipeline_mode<synchronous>, transform_indices = @transform_2, window_bounds = array<i64: 4, 128, 32>}, {pipeline_mode = #tpu.pipeline_mode<synchronous>, transform_indices = @transform_3, window_bounds = array<i64: 4, 128, 32>}, {pipeline_mode = #tpu.pipeline_mode<synchronous>, transform_indices = @transform_4, window_bounds = array<i64: 4, 128, 32>}, {pipeline_mode = #tpu.pipeline_mode<synchronous>, transform_indices = @transform_5, window_bounds = array<i64: 4, 32, 128>}, {transform_indices = @transform_6, window_bounds = array<i64: 1, 8, 128>}]} {
    %c0 = arith.constant 0 : index
    %c0_0 = arith.constant 0 : index
    %c0_1 = arith.constant 0 : index
    %0 = vector.load %arg1[%c0, %c0_0, %c0_1] : memref<1x8x128xf32, #tpu.memory_space<vmem>>, vector<1x8x128xf32>
    %1 = vector.shape_cast %0 : vector<1x8x128xf32> to vector<8x128xf32>
    %c0_2 = arith.constant 0 : index
    %c0_3 = arith.constant 0 : index
    %c0_4 = arith.constant 0 : index
    %2 = vector.load %arg2[%c0_2, %c0_3, %c0_4] : memref<1x8x8xi32, #tpu.memory_space<vmem>>, vector<1x8x8xi32>
    %3 = vector.shape_cast %2 : vector<1x8x8xi32> to vector<8x8xi32>
    %c0_i32 = arith.constant 0 : i32
    %4 = vector.broadcast %c0_i32 : i32 to vector<8x8xi32>
    %5 = arith.cmpi ne, %3, %4 : vector<8x8xi32>
    %c0_5 = arith.constant 0 : index
    %c0_6 = arith.constant 0 : index
    %c0_7 = arith.constant 0 : index
    %6 = vector.load %arg3[%c0_5, %c0_6, %c0_7] : memref<4x128x32xf32, #tpu.memory_space<vmem>>, vector<1x128x32xf32>
    %7 = vector.shape_cast %6 : vector<1x128x32xf32> to vector<128x32xf32>
    %cst = arith.constant dense<0.000000e+00> : vector<8x32xf32>
    %8 = tpu.matmul %1, %7, %cst {dimension_numbers = #tpu.dot_dimension_numbers<[1], [0], [0], [1], [0, 0, 1, 1], [], []>} : vector<8x128xf32>, vector<128x32xf32>, vector<8x32xf32> -> vector<8x32xf32>
    %c0_8 = arith.constant 0 : index
    %c0_9 = arith.constant 0 : index
    %c0_10 = arith.constant 0 : index
    %9 = vector.load %arg4[%c0_8, %c0_9, %c0_10] : memref<4x128x32xf32, #tpu.memory_space<vmem>>, vector<1x128x32xf32>
    %10 = vector.shape_cast %9 : vector<1x128x32xf32> to vector<128x32xf32>
    %cst_11 = arith.constant dense<0.000000e+00> : vector<8x32xf32>
    %11 = tpu.matmul %1, %10, %cst_11 {dimension_numbers = #tpu.dot_dimension_numbers<[1], [0], [0], [1], [0, 0, 1, 1], [], []>} : vector<8x128xf32>, vector<128x32xf32>, vector<8x32xf32> -> vector<8x32xf32>
    %c0_12 = arith.constant 0 : index
    %c0_13 = arith.constant 0 : index
    %c0_14 = arith.constant 0 : index
    %12 = vector.load %arg5[%c0_12, %c0_13, %c0_14] : memref<4x128x32xf32, #tpu.memory_space<vmem>>, vector<1x128x32xf32>
    %13 = vector.shape_cast %12 : vector<1x128x32xf32> to vector<128x32xf32>
    %cst_15 = arith.constant dense<0.000000e+00> : vector<8x32xf32>
    %14 = tpu.matmul %1, %13, %cst_15 {dimension_numbers = #tpu.dot_dimension_numbers<[1], [0], [0], [1], [0, 0, 1, 1], [], []>} : vector<8x128xf32>, vector<128x32xf32>, vector<8x32xf32> -> vector<8x32xf32>
    %cst_16 = arith.constant dense<0.000000e+00> : vector<8x8xf32>
    %15 = tpu.matmul %8, %11, %cst_16 {dimension_numbers = #tpu.dot_dimension_numbers<[1], [1], [0], [0], [0, 0, 1, 0], [], []>} : vector<8x32xf32>, vector<8x32xf32>, vector<8x8xf32> -> vector<8x8xf32>
    %cst_17 = arith.constant 0.176776692 : f32
    %16 = vector.broadcast %cst_17 : f32 to vector<8x8xf32>
    %17 = arith.mulf %16, %15 : vector<8x8xf32>
    %cst_18 = arith.constant -1.000000e+10 : f32
    %18 = vector.broadcast %cst_18 : f32 to vector<8x8xf32>
    %19 = arith.select %5, %18, %17 : vector<8x8xi1>, vector<8x8xf32>
    %cst_19 = arith.constant dense<0xFF800000> : vector<8xf32>
    %20 = vector.multi_reduction <maximumf>, %19, %cst_19 [1] : vector<8x8xf32> to vector<8xf32>
    %21 = vector.shape_cast %20 : vector<8xf32> to vector<8x1xf32>
    %22 = vector.broadcast %21 : vector<8x1xf32> to vector<8x8xf32>
    %23 = arith.subf %19, %22 : vector<8x8xf32>
    %24 = math.exp %23 : vector<8x8xf32>
    %cst_20 = arith.constant dense<0.000000e+00> : vector<8xf32>
    %25 = vector.multi_reduction <add>, %24, %cst_20 [1] : vector<8x8xf32> to vector<8xf32>
    %26 = vector.shape_cast %25 : vector<8xf32> to vector<8x1xf32>
    %27 = vector.broadcast %26 : vector<8x1xf32> to vector<8x8xf32>
    %28 = arith.divf %24, %27 : vector<8x8xf32>
    %cst_21 = arith.constant dense<0.000000e+00> : vector<8x32xf32>
    %29 = tpu.matmul %28, %14, %cst_21 {dimension_numbers = #tpu.dot_dimension_numbers<[1], [0], [0], [1], [0, 0, 1, 1], [], []>} : vector<8x8xf32>, vector<8x32xf32>, vector<8x32xf32> -> vector<8x32xf32>
    %c0_22 = arith.constant 0 : index
    %c0_23 = arith.constant 0 : index
    %c0_24 = arith.constant 0 : index
    %30 = vector.load %arg6[%c0_22, %c0_23, %c0_24] : memref<4x32x128xf32, #tpu.memory_space<vmem>>, vector<1x32x128xf32>
    %31 = vector.shape_cast %30 : vector<1x32x128xf32> to vector<32x128xf32>
    %cst_25 = arith.constant dense<0.000000e+00> : vector<8x128xf32>
    %32 = tpu.matmul %29, %31, %cst_25 {dimension_numbers = #tpu.dot_dimension_numbers<[1], [0], [0], [1], [0, 0, 1, 1], [], []>} : vector<8x32xf32>, vector<32x128xf32>, vector<8x128xf32> -> vector<8x128xf32>
    %c1 = arith.constant 1 : index
    %c0_26 = arith.constant 0 : index
    %c0_27 = arith.constant 0 : index
    %33 = vector.load %arg3[%c1, %c0_26, %c0_27] : memref<4x128x32xf32, #tpu.memory_space<vmem>>, vector<1x128x32xf32>
    %34 = vector.shape_cast %33 : vector<1x128x32xf32> to vector<128x32xf32>
    %cst_28 = arith.constant dense<0.000000e+00> : vector<8x32xf32>
    %35 = tpu.matmul %1, %34, %cst_28 {dimension_numbers = #tpu.dot_dimension_numbers<[1], [0], [0], [1], [0, 0, 1, 1], [], []>} : vector<8x128xf32>, vector<128x32xf32>, vector<8x32xf32> -> vector<8x32xf32>
    %c1_29 = arith.constant 1 : index
    %c0_30 = arith.constant 0 : index
    %c0_31 = arith.constant 0 : index
    %36 = vector.load %arg4[%c1_29, %c0_30, %c0_31] : memref<4x128x32xf32, #tpu.memory_space<vmem>>, vector<1x128x32xf32>
    %37 = vector.shape_cast %36 : vector<1x128x32xf32> to vector<128x32xf32>
    %cst_32 = arith.constant dense<0.000000e+00> : vector<8x32xf32>
    %38 = tpu.matmul %1, %37, %cst_32 {dimension_numbers = #tpu.dot_dimension_numbers<[1], [0], [0], [1], [0, 0, 1, 1], [], []>} : vector<8x128xf32>, vector<128x32xf32>, vector<8x32xf32> -> vector<8x32xf32>
    %c1_33 = arith.constant 1 : index
    %c0_34 = arith.constant 0 : index
    %c0_35 = arith.constant 0 : index
    %39 = vector.load %arg5[%c1_33, %c0_34, %c0_35] : memref<4x128x32xf32, #tpu.memory_space<vmem>>, vector<1x128x32xf32>
    %40 = vector.shape_cast %39 : vector<1x128x32xf32> to vector<128x32xf32>
    %cst_36 = arith.constant dense<0.000000e+00> : vector<8x32xf32>
    %41 = tpu.matmul %1, %40, %cst_36 {dimension_numbers = #tpu.dot_dimension_numbers<[1], [0], [0], [1], [0, 0, 1, 1], [], []>} : vector<8x128xf32>, vector<128x32xf32>, vector<8x32xf32> -> vector<8x32xf32>
    %cst_37 = arith.constant dense<0.000000e+00> : vector<8x8xf32>
    %42 = tpu.matmul %35, %38, %cst_37 {dimension_numbers = #tpu.dot_dimension_numbers<[1], [1], [0], [0], [0, 0, 1, 0], [], []>} : vector<8x32xf32>, vector<8x32xf32>, vector<8x8xf32> -> vector<8x8xf32>
    %cst_38 = arith.constant 0.176776692 : f32
    %43 = vector.broadcast %cst_38 : f32 to vector<8x8xf32>
    %44 = arith.mulf %43, %42 : vector<8x8xf32>
    %cst_39 = arith.constant -1.000000e+10 : f32
    %45 = vector.broadcast %cst_39 : f32 to vector<8x8xf32>
    %46 = arith.select %5, %45, %44 : vector<8x8xi1>, vector<8x8xf32>
    %cst_40 = arith.constant dense<0xFF800000> : vector<8xf32>
    %47 = vector.multi_reduction <maximumf>, %46, %cst_40 [1] : vector<8x8xf32> to vector<8xf32>
    %48 = vector.shape_cast %47 : vector<8xf32> to vector<8x1xf32>
    %49 = vector.broadcast %48 : vector<8x1xf32> to vector<8x8xf32>
    %50 = arith.subf %46, %49 : vector<8x8xf32>
    %51 = math.exp %50 : vector<8x8xf32>
    %cst_41 = arith.constant dense<0.000000e+00> : vector<8xf32>
    %52 = vector.multi_reduction <add>, %51, %cst_41 [1] : vector<8x8xf32> to vector<8xf32>
    %53 = vector.shape_cast %52 : vector<8xf32> to vector<8x1xf32>
    %54 = vector.broadcast %53 : vector<8x1xf32> to vector<8x8xf32>
    %55 = arith.divf %51, %54 : vector<8x8xf32>
    %cst_42 = arith.constant dense<0.000000e+00> : vector<8x32xf32>
    %56 = tpu.matmul %55, %41, %cst_42 {dimension_numbers = #tpu.dot_dimension_numbers<[1], [0], [0], [1], [0, 0, 1, 1], [], []>} : vector<8x8xf32>, vector<8x32xf32>, vector<8x32xf32> -> vector<8x32xf32>
    %c1_43 = arith.constant 1 : index
    %c0_44 = arith.constant 0 : index
    %c0_45 = arith.constant 0 : index
    %57 = vector.load %arg6[%c1_43, %c0_44, %c0_45] : memref<4x32x128xf32, #tpu.memory_space<vmem>>, vector<1x32x128xf32>
    %58 = vector.shape_cast %57 : vector<1x32x128xf32> to vector<32x128xf32>
    %cst_46 = arith.constant dense<0.000000e+00> : vector<8x128xf32>
    %59 = tpu.matmul %56, %58, %cst_46 {dimension_numbers = #tpu.dot_dimension_numbers<[1], [0], [0], [1], [0, 0, 1, 1], [], []>} : vector<8x32xf32>, vector<32x128xf32>, vector<8x128xf32> -> vector<8x128xf32>
    %60 = arith.addf %32, %59 : vector<8x128xf32>
    %c2 = arith.constant 2 : index
    %c0_47 = arith.constant 0 : index
    %c0_48 = arith.constant 0 : index
    %61 = vector.load %arg3[%c2, %c0_47, %c0_48] : memref<4x128x32xf32, #tpu.memory_space<vmem>>, vector<1x128x32xf32>
    %62 = vector.shape_cast %61 : vector<1x128x32xf32> to vector<128x32xf32>
    %cst_49 = arith.constant dense<0.000000e+00> : vector<8x32xf32>
    %63 = tpu.matmul %1, %62, %cst_49 {dimension_numbers = #tpu.dot_dimension_numbers<[1], [0], [0], [1], [0, 0, 1, 1], [], []>} : vector<8x128xf32>, vector<128x32xf32>, vector<8x32xf32> -> vector<8x32xf32>
    %c2_50 = arith.constant 2 : index
    %c0_51 = arith.constant 0 : index
    %c0_52 = arith.constant 0 : index
    %64 = vector.load %arg4[%c2_50, %c0_51, %c0_52] : memref<4x128x32xf32, #tpu.memory_space<vmem>>, vector<1x128x32xf32>
    %65 = vector.shape_cast %64 : vector<1x128x32xf32> to vector<128x32xf32>
    %cst_53 = arith.constant dense<0.000000e+00> : vector<8x32xf32>
    %66 = tpu.matmul %1, %65, %cst_53 {dimension_numbers = #tpu.dot_dimension_numbers<[1], [0], [0], [1], [0, 0, 1, 1], [], []>} : vector<8x128xf32>, vector<128x32xf32>, vector<8x32xf32> -> vector<8x32xf32>
    %c2_54 = arith.constant 2 : index
    %c0_55 = arith.constant 0 : index
    %c0_56 = arith.constant 0 : index
    %67 = vector.load %arg5[%c2_54, %c0_55, %c0_56] : memref<4x128x32xf32, #tpu.memory_space<vmem>>, vector<1x128x32xf32>
    %68 = vector.shape_cast %67 : vector<1x128x32xf32> to vector<128x32xf32>
    %cst_57 = arith.constant dense<0.000000e+00> : vector<8x32xf32>
    %69 = tpu.matmul %1, %68, %cst_57 {dimension_numbers = #tpu.dot_dimension_numbers<[1], [0], [0], [1], [0, 0, 1, 1], [], []>} : vector<8x128xf32>, vector<128x32xf32>, vector<8x32xf32> -> vector<8x32xf32>
    %cst_58 = arith.constant dense<0.000000e+00> : vector<8x8xf32>
    %70 = tpu.matmul %63, %66, %cst_58 {dimension_numbers = #tpu.dot_dimension_numbers<[1], [1], [0], [0], [0, 0, 1, 0], [], []>} : vector<8x32xf32>, vector<8x32xf32>, vector<8x8xf32> -> vector<8x8xf32>
    %cst_59 = arith.constant 0.176776692 : f32
    %71 = vector.broadcast %cst_59 : f32 to vector<8x8xf32>
    %72 = arith.mulf %71, %70 : vector<8x8xf32>
    %cst_60 = arith.constant -1.000000e+10 : f32
    %73 = vector.broadcast %cst_60 : f32 to vector<8x8xf32>
    %74 = arith.select %5, %73, %72 : vector<8x8xi1>, vector<8x8xf32>
    %cst_61 = arith.constant dense<0xFF800000> : vector<8xf32>
    %75 = vector.multi_reduction <maximumf>, %74, %cst_61 [1] : vector<8x8xf32> to vector<8xf32>
    %76 = vector.shape_cast %75 : vector<8xf32> to vector<8x1xf32>
    %77 = vector.broadcast %76 : vector<8x1xf32> to vector<8x8xf32>
    %78 = arith.subf %74, %77 : vector<8x8xf32>
    %79 = math.exp %78 : vector<8x8xf32>
    %cst_62 = arith.constant dense<0.000000e+00> : vector<8xf32>
    %80 = vector.multi_reduction <add>, %79, %cst_62 [1] : vector<8x8xf32> to vector<8xf32>
    %81 = vector.shape_cast %80 : vector<8xf32> to vector<8x1xf32>
    %82 = vector.broadcast %81 : vector<8x1xf32> to vector<8x8xf32>
    %83 = arith.divf %79, %82 : vector<8x8xf32>
    %cst_63 = arith.constant dense<0.000000e+00> : vector<8x32xf32>
    %84 = tpu.matmul %83, %69, %cst_63 {dimension_numbers = #tpu.dot_dimension_numbers<[1], [0], [0], [1], [0, 0, 1, 1], [], []>} : vector<8x8xf32>, vector<8x32xf32>, vector<8x32xf32> -> vector<8x32xf32>
    %c2_64 = arith.constant 2 : index
    %c0_65 = arith.constant 0 : index
    %c0_66 = arith.constant 0 : index
    %85 = vector.load %arg6[%c2_64, %c0_65, %c0_66] : memref<4x32x128xf32, #tpu.memory_space<vmem>>, vector<1x32x128xf32>
    %86 = vector.shape_cast %85 : vector<1x32x128xf32> to vector<32x128xf32>
    %cst_67 = arith.constant dense<0.000000e+00> : vector<8x128xf32>
    %87 = tpu.matmul %84, %86, %cst_67 {dimension_numbers = #tpu.dot_dimension_numbers<[1], [0], [0], [1], [0, 0, 1, 1], [], []>} : vector<8x32xf32>, vector<32x128xf32>, vector<8x128xf32> -> vector<8x128xf32>
    %88 = arith.addf %60, %87 : vector<8x128xf32>
    %c3 = arith.constant 3 : index
    %c0_68 = arith.constant 0 : index
    %c0_69 = arith.constant 0 : index
    %89 = vector.load %arg3[%c3, %c0_68, %c0_69] : memref<4x128x32xf32, #tpu.memory_space<vmem>>, vector<1x128x32xf32>
    %90 = vector.shape_cast %89 : vector<1x128x32xf32> to vector<128x32xf32>
    %cst_70 = arith.constant dense<0.000000e+00> : vector<8x32xf32>
    %91 = tpu.matmul %1, %90, %cst_70 {dimension_numbers = #tpu.dot_dimension_numbers<[1], [0], [0], [1], [0, 0, 1, 1], [], []>} : vector<8x128xf32>, vector<128x32xf32>, vector<8x32xf32> -> vector<8x32xf32>
    %c3_71 = arith.constant 3 : index
    %c0_72 = arith.constant 0 : index
    %c0_73 = arith.constant 0 : index
    %92 = vector.load %arg4[%c3_71, %c0_72, %c0_73] : memref<4x128x32xf32, #tpu.memory_space<vmem>>, vector<1x128x32xf32>
    %93 = vector.shape_cast %92 : vector<1x128x32xf32> to vector<128x32xf32>
    %cst_74 = arith.constant dense<0.000000e+00> : vector<8x32xf32>
    %94 = tpu.matmul %1, %93, %cst_74 {dimension_numbers = #tpu.dot_dimension_numbers<[1], [0], [0], [1], [0, 0, 1, 1], [], []>} : vector<8x128xf32>, vector<128x32xf32>, vector<8x32xf32> -> vector<8x32xf32>
    %c3_75 = arith.constant 3 : index
    %c0_76 = arith.constant 0 : index
    %c0_77 = arith.constant 0 : index
    %95 = vector.load %arg5[%c3_75, %c0_76, %c0_77] : memref<4x128x32xf32, #tpu.memory_space<vmem>>, vector<1x128x32xf32>
    %96 = vector.shape_cast %95 : vector<1x128x32xf32> to vector<128x32xf32>
    %cst_78 = arith.constant dense<0.000000e+00> : vector<8x32xf32>
    %97 = tpu.matmul %1, %96, %cst_78 {dimension_numbers = #tpu.dot_dimension_numbers<[1], [0], [0], [1], [0, 0, 1, 1], [], []>} : vector<8x128xf32>, vector<128x32xf32>, vector<8x32xf32> -> vector<8x32xf32>
    %cst_79 = arith.constant dense<0.000000e+00> : vector<8x8xf32>
    %98 = tpu.matmul %91, %94, %cst_79 {dimension_numbers = #tpu.dot_dimension_numbers<[1], [1], [0], [0], [0, 0, 1, 0], [], []>} : vector<8x32xf32>, vector<8x32xf32>, vector<8x8xf32> -> vector<8x8xf32>
    %cst_80 = arith.constant 0.176776692 : f32
    %99 = vector.broadcast %cst_80 : f32 to vector<8x8xf32>
    %100 = arith.mulf %99, %98 : vector<8x8xf32>
    %cst_81 = arith.constant -1.000000e+10 : f32
    %101 = vector.broadcast %cst_81 : f32 to vector<8x8xf32>
    %102 = arith.select %5, %101, %100 : vector<8x8xi1>, vector<8x8xf32>
    %cst_82 = arith.constant dense<0xFF800000> : vector<8xf32>
    %103 = vector.multi_reduction <maximumf>, %102, %cst_82 [1] : vector<8x8xf32> to vector<8xf32>
    %104 = vector.shape_cast %103 : vector<8xf32> to vector<8x1xf32>
    %105 = vector.broadcast %104 : vector<8x1xf32> to vector<8x8xf32>
    %106 = arith.subf %102, %105 : vector<8x8xf32>
    %107 = math.exp %106 : vector<8x8xf32>
    %cst_83 = arith.constant dense<0.000000e+00> : vector<8xf32>
    %108 = vector.multi_reduction <add>, %107, %cst_83 [1] : vector<8x8xf32> to vector<8xf32>
    %109 = vector.shape_cast %108 : vector<8xf32> to vector<8x1xf32>
    %110 = vector.broadcast %109 : vector<8x1xf32> to vector<8x8xf32>
    %111 = arith.divf %107, %110 : vector<8x8xf32>
    %cst_84 = arith.constant dense<0.000000e+00> : vector<8x32xf32>
    %112 = tpu.matmul %111, %97, %cst_84 {dimension_numbers = #tpu.dot_dimension_numbers<[1], [0], [0], [1], [0, 0, 1, 1], [], []>} : vector<8x8xf32>, vector<8x32xf32>, vector<8x32xf32> -> vector<8x32xf32>
    %c3_85 = arith.constant 3 : index
    %c0_86 = arith.constant 0 : index
    %c0_87 = arith.constant 0 : index
    %113 = vector.load %arg6[%c3_85, %c0_86, %c0_87] : memref<4x32x128xf32, #tpu.memory_space<vmem>>, vector<1x32x128xf32>
    %114 = vector.shape_cast %113 : vector<1x32x128xf32> to vector<32x128xf32>
    %cst_88 = arith.constant dense<0.000000e+00> : vector<8x128xf32>
    %115 = tpu.matmul %112, %114, %cst_88 {dimension_numbers = #tpu.dot_dimension_numbers<[1], [0], [0], [1], [0, 0, 1, 1], [], []>} : vector<8x32xf32>, vector<32x128xf32>, vector<8x128xf32> -> vector<8x128xf32>
    %116 = arith.addf %88, %115 : vector<8x128xf32>
    %117 = arith.addf %1, %116 : vector<8x128xf32>
    %c0_89 = arith.constant 0 : index
    %c0_90 = arith.constant 0 : index
    %c0_91 = arith.constant 0 : index
    %118 = vector.load %arg7[%c0_89, %c0_90, %c0_91] : memref<1x8x128xf32, #tpu.memory_space<vmem>>, vector<1x8x128xf32>
    %119 = vector.shape_cast %118 : vector<1x8x128xf32> to vector<8x128xf32>
    %120 = vector.shape_cast %117 : vector<8x128xf32> to vector<1x8x128xf32>
    tpu.vector_store %arg7[%c0_89, %c0_90, %c0_91], %120 {strides = array<i32>} : memref<1x8x128xf32, #tpu.memory_space<vmem>>, vector<1x8x128xf32>,
    return
  }
  func.func @transform_0(%arg0: i32) -> (i32, i32, i32) {
    %c0_i32 = arith.constant 0 : i32
    %c0_i32_0 = arith.constant 0 : i32
    %c0_i32_1 = arith.constant 0 : i32
    return %arg0, %c0_i32, %c0_i32_0 : i32, i32, i32
  }
  func.func @transform_1(%arg0: i32) -> (i32, i32, i32) {
    %c0_i32 = arith.constant 0 : i32
    %c0_i32_0 = arith.constant 0 : i32
    %c0_i32_1 = arith.constant 0 : i32
    return %arg0, %c0_i32, %c0_i32_0 : i32, i32, i32
  }
  func.func @transform_2(%arg0: i32) -> (i32, i32, i32) {
    %c0_i32 = arith.constant 0 : i32
    %c0_i32_0 = arith.constant 0 : i32
    %c0_i32_1 = arith.constant 0 : i32
    %c0_i32_2 = arith.constant 0 : i32
    return %c0_i32, %c0_i32_0, %c0_i32_1 : i32, i32, i32
  }
  func.func @transform_3(%arg0: i32) -> (i32, i32, i32) {
    %c0_i32 = arith.constant 0 : i32
    %c0_i32_0 = arith.constant 0 : i32
    %c0_i32_1 = arith.constant 0 : i32
    %c0_i32_2 = arith.constant 0 : i32
    return %c0_i32, %c0_i32_0, %c0_i32_1 : i32, i32, i32
  }
  func.func @transform_4(%arg0: i32) -> (i32, i32, i32) {
    %c0_i32 = arith.constant 0 : i32
    %c0_i32_0 = arith.constant 0 : i32
    %c0_i32_1 = arith.constant 0 : i32
    %c0_i32_2 = arith.constant 0 : i32
    return %c0_i32, %c0_i32_0, %c0_i32_1 : i32, i32, i32
  }
  func.func @transform_5(%arg0: i32) -> (i32, i32, i32) {
    %c0_i32 = arith.constant 0 : i32
    %c0_i32_0 = arith.constant 0 : i32
    %c0_i32_1 = arith.constant 0 : i32
    %c0_i32_2 = arith.constant 0 : i32
    return %c0_i32, %c0_i32_0, %c0_i32_1 : i32, i32, i32
  }
  func.func @transform_6(%arg0: i32) -> (i32, i32, i32) {
    %c0_i32 = arith.constant 0 : i32
    %c0_i32_0 = arith.constant 0 : i32
    %c0_i32_1 = arith.constant 0 : i32
    return %arg0, %c0_i32, %c0_i32_0 : i32, i32, i32
  }
}

</mosaic_0001>

<bundles_post_ra>
// kernel: tpu_custom_call.1
= control target key start
LH: loop header
LB: loop body
LE: loop exit
PB: predicated region body
PF: predicated region fallthrough
CT: control target
= control target key end

     0   :  { %11 = vsyncpa [#allocation3], 0  ;;  %s2335_s0 = inlined_call_operand.vmem [shape: f32[2,8,128], index: 0, kind: input, shape index: {}]   ;;  %s2336_s1 = inlined_call_operand.vmem [shape: s32[2,8,8], index: 1, kind: input, shape index: {}]   ;;  %s2337_s2 = inlined_call_operand.vmem [shape: f32[4,128,32], index: 2, kind: input, shape index: {}]   ;;  %s2338_s3 = inlined_call_operand.vmem [shape: f32[4,128,32], index: 3, kind: input, shape index: {}]   ;;  %s2339_s4 = inlined_call_operand.vmem [shape: f32[4,128,32], index: 4, kind: input, shape index: {}]   ;;  %s2340_s5 = inlined_call_operand.vmem [shape: f32[4,32,128], index: 5, kind: input, shape index: {}]   ;;  %s2341_s6 = inlined_call_operand.hbm [shape: f32[2,8,128], index: 6, kind: output, shape index: {}]  }
   0x1   :  { %13 = vsyncpa [#allocation3 + $0x1], 0  ;;  %s1550_s21 = smov 0   ;;  %s1552_s22 = smov 0  }
   0x2   :  { %s1554_s23 = smov 0   ;;  %s1556_s24 = smov 0  }
   0x3 LB: > { %s1571_s25 = sadd.s32 4294967295, %s1513_s24   ;;  %s1212_s26 = sadd.s32 4294967294, %s1513_s24   ;;  %s1513_s24 = sphi %s1556_s24, %s2347_s24   ;;  %s1509_s23 = sphi %s1554_s23, %s2346_s23   ;;  %s1505_s22 = sphi %s1552_s22, %s2345_s22   ;;  %s1501_s21 = sphi %s1550_s21, %s2344_s21  }
   0x4   : > { %s1575_s27 = sadd.s32 1, %s1513_s24   ;;  %s162_s28 = sadd.s32 1, %s1509_s23 }
   0x5   : > { %s159_s29 = ssub.s32 %s1513_s24, %s1575_s27  ;;  %p172_p0 = scmp.ne.s32.totalorder %s1509_s23, %s1505_s22 }
   0x6   : > { %p160_p1 = scmp.eq.s32.totalorder %s159_s29, 0  ;;  %p173_p2 = scmp.eq.s32.totalorder %s1571_s25, 1 }
   0x7   : > { %p178_p3 = scmp.ne.s32.totalorder %s1505_s22, %s1501_s21  ;;  %p179_p4 = scmp.eq.s32.totalorder %s1212_s26, 1 }
   0x8   : > { %s1586_s30 = scalar_select %p160_p1, %s1509_s23, %s162_s28  }
   0x9   : > { %p1588_p5 = por %p173_p2, %p172_p0  ;;  %p1592_p6 = por %p179_p4, %p178_p3 }
   0xa   : > { %p1215_p7 = scmp.ge.s32.totalorder %s1513_s24, 1  ;;  %p223_p8 = scmp.lt.s32.totalorder %s1513_s24, 3 }
   0xc   : > { %p224_p9 = pnand %p1215_p7, %p223_p8 }
   0xd   : > { %p256_p10 = scmp.lt.s32.totalorder (!%p224_p9), %s1571_s25, 1  ;;  %s1392_s16 = sshll.u32 (!%p224_p9), %s1571_s25, 3 }
   0xe   : > { %227 = sbr.rel (%p224_p9) target bundleno = 2698 (0xa8a), region = 44  ;;  %s1136_s20 = scalar_lea.hbm (!%p224_p9), %s2341_s6, %s1392_s16 }
   0xf   : > { %s1140_s9 = sshll.u32 (!%p224_p9), %s1136_s20, 4  ;;  %s1471_s15 = scalar_lea.hbm (!%p224_p9), %s2341_s6, 16  ;;  %s1141_s9 = int_to_ptr.hbm [resolvable:$true] %s1140_s9 }
  0x10   : > { %s1465_s11 = sshra.s32 (!%p224_p9), %s1141_s9, 4  ;;  %s1466_s11 = int_to_ptr.hbm [resolvable:$true] %s1465_s11 }
  0x11   : > { %p1472_p0 = scmp.lt.s32.totalorder (!%p224_p9), %s1466_s11, %s2341_s6 }
  0x13   : > { %v318_v0 = vld [vmem:[%s2338_s3 + $0x78] sm:$0xff]  ;;  %v317_v1 = vld [vmem:[%s2338_s3 + $0x70] sm:$0xff]  ;;  %v316_v4 = vld [vmem:[%s2338_s3 + $0x68] sm:$0xff]  ;;  %s1666_s29 = scalar_select %p256_p10, %s1571_s25, 1  ;;  %vm375_vm0 = vcmask 261120   ;;  %vm404_vm2 = vcmask 64512  }
  0x14   : > { %v282_v2 = vld [vmem:[%s2337_s2 + $0x78] sm:$0xff]  ;;  %319 = vmatpush.msra.mxu1 %v318_v0  ;;  %v281_v3 = vld [vmem:[%s2337_s2 + $0x70] sm:$0xff]  ;;  %v280_v5 = vld [vmem:[%s2337_s2 + $0x68] sm:$0xff]  ;;  %s1467_s25 = scalar_lea.hbm %s1466_s11, 8 }
  0x15   : > { %283 = vmatpush.msra.mxu0 %v282_v2  ;;  %v315_v6 = vld [vmem:[%s2338_s3 + $0x60] sm:$0xff]  ;;  %v314_v8 = vld [vmem:[%s2338_s3 + $0x58] sm:$0xff]  ;;  %v313_v10 = vld [vmem:[%s2338_s3 + $0x50] sm:$0xff]  ;;  %s1217_s17 = sshll.u32 %s1666_s29, 3  ;;  %s253_s29 = sand.u32 1, %s1505_s22  }
  0x16   : > { %320 = vmatpush.msra.mxu1 %v317_v1  ;;  %v279_v7 = vld [vmem:[%s2337_s2 + $0x60] sm:$0xff]  ;;  %v278_v9 = vld [vmem:[%s2337_s2 + $0x58] sm:$0xff]  ;;  %v277_v11 = vld [vmem:[%s2337_s2 + $0x50] sm:$0xff]  ;;  %s1698_s14 = scalar_lea.vmem %s2335_s0, %s1217_s17  ;;  %s263_s28 = scalar_lea.vmem %s2336_s1, %s1217_s17 }
  0x17   : > { %284 = vmatpush.msra.mxu0 %v281_v3  ;;  %v312_v12 = vld [vmem:[%s2338_s3 + $0x48] sm:$0xff]  ;;  %v311_v14 = vld [vmem:[%s2338_s3 + $0x40] sm:$0xff]  ;;  %v310_v16 = vld [vmem:[%s2338_s3 + $0x38] sm:$0xff]  ;;  %s1216_s17 = sshll.u32 %s253_s29, 3  ;;  %s1126_s10 = scalar_lea.sflag [#allocation3], %s253_s29 }
  0x18   : > { %321 = vmatpush.msra.mxu1 %v316_v4  ;;  %v276_v13 = vld [vmem:[%s2337_s2 + $0x48] sm:$0xff]  ;;  %v275_v15 = vld [vmem:[%s2337_s2 + $0x40] sm:$0xff]  ;;  %v274_v17 = vld [vmem:[%s2337_s2 + $0x38] sm:$0xff]  ;;  %s255_s26 = scalar_lea.vmem [#allocation2], %s1216_s17  ;;  %p1468_p11 = scmp.ne.s32.totalorder %s1466_s11, %s1467_s25 }
  0x19   : > { %285 = vmatpush.msra.mxu0 %v280_v5  ;;  %v309_v18 = vld [vmem:[%s2338_s3 + $0x30] sm:$0xff]  ;;  %v308_v20 = vld [vmem:[%s2338_s3 + $0x28] sm:$0xff]  ;;  %v307_v22 = vld [vmem:[%s2338_s3 + $0x20] sm:$0xff]  ;;  %p1473_p1 = scmp.lt.s32.totalorder %s1471_s15, %s1467_s25 }
  0x1a   : > { %322 = vmatpush.msra.mxu1 %v315_v6  ;;  %v273_v19 = vld [vmem:[%s2337_s2 + $0x30] sm:$0xff]  ;;  %v272_v21 = vld [vmem:[%s2337_s2 + $0x28] sm:$0xff]  ;;  %v271_v23 = vld [vmem:[%s2337_s2 + $0x20] sm:$0xff]  ;;  %p1469_p12 = pnand %p1468_p11, %p1588_p5 }
  0x1b   : > { %286 = vmatpush.msra.mxu0 %v279_v7  ;;  %v306_v24 = vld [vmem:[%s2338_s3 + $0x18] sm:$0xff]  ;;  %v305_v26 = vld [vmem:[%s2338_s3 + $0x10] sm:$0xff]  ;;  %v304_v28 = vld [vmem:[%s2338_s3 + $0x8] sm:$0xff]  ;;  %p1474_p2 = por %p1473_p1, %p1472_p0 }
  0x1c   : > { %323 = vmatpush.msra.mxu1 %v314_v8  ;;  %v270_v25 = vld [vmem:[%s2337_s2 + $0x18] sm:$0xff]  ;;  %v269_v27 = vld [vmem:[%s2337_s2 + $0x10] sm:$0xff]  ;;  %v268_v29 = vld [vmem:[%s2337_s2 + $0x8] sm:$0xff]  ;;  %p1470_p13 = pneg %p1469_p12 }
  0x1d   : > { %287 = vmatpush.msra.mxu0 %v278_v9  ;;  %v303_v30 = vld [vmem:[%s2338_s3] sm:$0xff]  ;;  %v354_v35 = vld [vmem:[%s2339_s4 + $0x78] sm:$0xff]  ;;  %v353_v36 = vld [vmem:[%s2339_s4 + $0x70] sm:$0xff] }
  0x1e   : > { %324 = vmatpush.msra.mxu1 %v313_v10  ;;  %v267_v31 = vld [vmem:[%s2337_s2] sm:$0xff]  ;;  %355 = vmatpush.msra.mxu2 %v354_v35  ;;  %v352_v37 = vld [vmem:[%s2339_s4 + $0x68] sm:$0xff]  ;;  %v350_v39 = vld [vmem:[%s2339_s4 + $0x58] sm:$0xff]  ;;  %p1475_p3 = pnand %p1474_p2, %p1470_p13 }
  0x1f   : > { %288 = vmatpush.msra.mxu0 %v277_v11  ;;  %v1707_v32 = vld [vmem:[%s1698_s14] sm:$0xff]  ;;  %v349_v40 = vld [vmem:[%s2339_s4 + $0x50] sm:$0xff]  ;;  %v348_v41 = vld [vmem:[%s2339_s4 + $0x48] sm:$0xff] }
  0x20   : > { %325 = vmatpush.msra.mxu1 %v312_v12  ;;  %356 = vmatpush.msra.mxu2 %v353_v36  ;;  %v351_v38 = vld [vmem:[%s2339_s4 + $0x60] sm:$0xff]  ;;  %v346_v43 = vld [vmem:[%s2339_s4 + $0x38] sm:$0xff]  ;;  %v345_v44 = vld [vmem:[%s2339_s4 + $0x30] sm:$0xff] }
  0x21   : > { %289 = vmatpush.msra.mxu0 %v276_v13  ;;  %v347_v42 = vld [vmem:[%s2339_s4 + $0x40] sm:$0xff]  ;;  %v344_v45 = vld [vmem:[%s2339_s4 + $0x28] sm:$0xff]  ;;  %v342_v47 = vld [vmem:[%s2339_s4 + $0x18] sm:$0xff] }
  0x22   : > { %326 = vmatpush.msra.mxu1 %v311_v14  ;;  %357 = vmatpush.msra.mxu2 %v352_v37  ;;  %v343_v46 = vld [vmem:[%s2339_s4 + $0x20] sm:$0xff]  ;;  %v341_v49 = vld [vmem:[%s2339_s4 + $0x10] sm:$0xff]  ;;  %v340_v50 = vld [vmem:[%s2339_s4 + $0x8] sm:$0xff] }
  0x23   : > { %290 = vmatpush.msra.mxu0 %v275_v15  ;;  %v1757_v48 = vld [vmem:[%s263_s28] sm:$0xff]  ;;  %v1253_v56 = vld [vmem:[%s2338_s3 + $0xf8] sm:$0xff]  ;;  %v1236_v0 = vld [vmem:[%s2337_s2 + $0xf0] sm:$0xff]  ;;  %s1138_s28 = sshll.u32 %s255_s26, 4  ;;  %s1139_s28 = int_to_ptr.vmem [resolvable:$true] %s1138_s28 }
  0x24   : > { %327 = vmatpush.msra.mxu1 %v310_v16  ;;  %358 = vmatpush.msra.mxu2 %v351_v38  ;;  %vm266_vm1 = vcmp.ne.s32.totalorder %v1757_v48, 0  ;;  %v339_v53 = vld [vmem:[%s2339_s4] sm:$0xff]  ;;  %v1237_v62 = vld [vmem:[%s2337_s2 + $0xf8] sm:$0xff]  ;;  %v1235_v1 = vld [vmem:[%s2337_s2 + $0xe8] sm:$0xff] }
  0x25   : > { %291 = vmatpush.msra.mxu0 %v274_v17  ;;  %v1252_v2 = vld [vmem:[%s2338_s3 + $0xf0] sm:$0xff]  ;;  %v1234_v3 = vld [vmem:[%s2337_s2 + $0xe0] sm:$0xff]  ;;  %v1251_v4 = vld [vmem:[%s2338_s3 + $0xe8] sm:$0xff] }
  0x26   : > { %328 = vmatpush.msra.mxu1 %v309_v18  ;;  %359 = vmatpush.msra.mxu2 %v350_v39  ;;  %v1233_v5 = vld [vmem:[%s2337_s2 + $0xd8] sm:$0xff]  ;;  %v1250_v6 = vld [vmem:[%s2338_s3 + $0xe0] sm:$0xff]  ;;  %v1232_v7 = vld [vmem:[%s2337_s2 + $0xd0] sm:$0xff] }
  0x27   : > { %292 = vmatpush.msra.mxu0 %v273_v19  ;;  %v1249_v8 = vld [vmem:[%s2338_s3 + $0xd8] sm:$0xff]  ;;  %v1231_v9 = vld [vmem:[%s2337_s2 + $0xc8] sm:$0xff]  ;;  %v1248_v10 = vld [vmem:[%s2338_s3 + $0xd0] sm:$0xff] }
  0x28   : > { %329 = vmatpush.msra.mxu1 %v308_v20  ;;  %360 = vmatpush.msra.mxu2 %v349_v40  ;;  %v1230_v11 = vld [vmem:[%s2337_s2 + $0xc0] sm:$0xff]  ;;  %v1247_v12 = vld [vmem:[%s2338_s3 + $0xc8] sm:$0xff]  ;;  %v1229_v13 = vld [vmem:[%s2337_s2 + $0xb8] sm:$0xff] }
  0x29   : > { %293 = vmatpush.msra.mxu0 %v272_v21  ;;  %v1246_v14 = vld [vmem:[%s2338_s3 + $0xc0] sm:$0xff]  ;;  %v1228_v15 = vld [vmem:[%s2337_s2 + $0xb0] sm:$0xff]  ;;  %v1245_v16 = vld [vmem:[%s2338_s3 + $0xb8] sm:$0xff] }
  0x2a   : > { %330 = vmatpush.msra.mxu1 %v307_v22  ;;  %361 = vmatpush.msra.mxu2 %v348_v41  ;;  %v1227_v17 = vld [vmem:[%s2337_s2 + $0xa8] sm:$0xff]  ;;  %v1244_v18 = vld [vmem:[%s2338_s3 + $0xb0] sm:$0xff]  ;;  %v1226_v19 = vld [vmem:[%s2337_s2 + $0xa0] sm:$0xff] }
  0x2b   : > { %294 = vmatpush.msra.mxu0 %v271_v23  ;;  %v1243_v20 = vld [vmem:[%s2338_s3 + $0xa8] sm:$0xff]  ;;  %v1225_v21 = vld [vmem:[%s2337_s2 + $0x98] sm:$0xff]  ;;  %v1242_v22 = vld [vmem:[%s2338_s3 + $0xa0] sm:$0xff] }
  0x2c   : > { %331 = vmatpush.msra.mxu1 %v306_v24  ;;  %362 = vmatpush.msra.mxu2 %v347_v42  ;;  %v1224_v23 = vld [vmem:[%s2337_s2 + $0x90] sm:$0xff]  ;;  %v1241_v24 = vld [vmem:[%s2338_s3 + $0x98] sm:$0xff] }
  0x2d   : > { %295 = vmatpush.msra.mxu0 %v270_v25  ;;  %v1223_v25 = vld [vmem:[%s2337_s2 + $0x88] sm:$0xff]  ;;  %v1369_v48 = vld [vmem:[%s2339_s4 + $0x190] sm:$0xff] }
  0x2e   : > { %332 = vmatpush.msra.mxu1 %v305_v26  ;;  %363 = vmatpush.msra.mxu2 %v346_v43  ;;  %v1240_v26 = vld [vmem:[%s2338_s3 + $0x90] sm:$0xff] }
  0x2f   : > { %296 = vmatpush.msra.mxu0 %v269_v27  ;;  %v1222_v27 = vld [vmem:[%s2337_s2 + $0x80] sm:$0xff] }
  0x30   : > { %333 = vmatpush.msra.mxu1 %v304_v28  ;;  %364 = vmatpush.msra.mxu2 %v345_v44  ;;  %v1239_v28 = vld [vmem:[%s2338_s3 + $0x88] sm:$0xff] }
  0x31   : > { %297 = vmatpush.msra.mxu0 %v268_v29  ;;  %v1238_v29 = vld [vmem:[%s2338_s3 + $0x80] sm:$0xff] }
  0x32   : > { %334 = vmatpush.msra.mxu1 %v303_v30  ;;  %365 = vmatpush.msra.mxu2 %v344_v45 }
  0x33   : > { %298 = vmatpush.msra.mxu0 %v267_v31  ;;  %335 = vmatmul.f32.vlgmr.msra.gmra.mxu1 %v1707_v32 }
  0x34   : > { %299 = vmatmul.f32.vlgmr.msra.gmra.mxu0 %v1707_v32  ;;  %366 = vmatpush.msra.mxu2 %v343_v46  ;;  %v1269_v46 = vld [vmem:[%s2339_s4 + $0xf8] sm:$0xff] }
  0x35   : > { %510 = vmatpush.msrb.mxu0 %v1253_v56  ;;  %547 = vmatpush.msrb.mxu1 %v1269_v46  ;;  %v1306_v46 = vld [vmem:[%s2338_s3 + $0x158] sm:$0xff] }
  0x36   : > { %367 = vmatpush.msra.mxu2 %v342_v47  ;;  %v1268_v47 = vld [vmem:[%s2339_s4 + $0xf0] sm:$0xff] }
  0x37   : > { %511 = vmatpush.msrb.mxu0 %v1252_v2  ;;  %548 = vmatpush.msrb.mxu1 %v1268_v47  ;;  %v1254_v2 = vld [vmem:[%s2339_s4 + $0x80] sm:$0xff]  ;;  %v1305_v47 = vld [vmem:[%s2338_s3 + $0x150] sm:$0xff] }
  0x38   : > { %368 = vmatpush.msra.mxu2 %v341_v49  ;;  %v1267_v49 = vld [vmem:[%s2339_s4 + $0xe8] sm:$0xff] }
  0x39   : > { %512 = vmatpush.msrb.mxu0 %v1251_v4  ;;  %549 = vmatpush.msrb.mxu1 %v1267_v49  ;;  %v1304_v49 = vld [vmem:[%s2338_s3 + $0x148] sm:$0xff] }
  0x3a   : > { %369 = vmatpush.msra.mxu2 %v340_v50  ;;  %v1266_v50 = vld [vmem:[%s2339_s4 + $0xe0] sm:$0xff] }
  0x3b   : > { %513 = vmatpush.msrb.mxu0 %v1250_v6  ;;  %550 = vmatpush.msrb.mxu1 %v1266_v50  ;;  %v1303_v50 = vld [vmem:[%s2338_s3 + $0x140] sm:$0xff] }
  0x3c   : > { %370 = vmatpush.msra.mxu2 %v339_v53  ;;  %v1263_v53 = vld [vmem:[%s2339_s4 + $0xc8] sm:$0xff] }
  0x3d   : > { %371 = vmatmul.f32.vlgmr.msra.gmra.mxu2 %v1707_v32  ;;  %514 = vmatpush.msrb.mxu0 %v1249_v8 }
  0x3f   : > { %515 = vmatpush.msrb.mxu0 %v1248_v10  ;;  %v454_v10 = vld [vmem:[%s2340_s5 + $0x10] sm:$0xff] }
  0x41   : > { %516 = vmatpush.msrb.mxu0 %v1247_v12  ;;  %v452_v12 = vld [vmem:[%s2340_s5] sm:$0xff] }
  0x43   : > { %517 = vmatpush.msrb.mxu0 %v1246_v14  ;;  %v1275_v14 = vld [vmem:[%s2340_s5 + $0x30] sm:$0xff] }
  0x45   : > { %518 = vmatpush.msrb.mxu0 %v1245_v16 }
  0x47   : > { %519 = vmatpush.msrb.mxu0 %v1244_v18  ;;  %v1294_v18 = vld [vmem:[%s2337_s2 + $0x178] sm:$0xff] }
  0x49   : > { %520 = vmatpush.msrb.mxu0 %v1243_v20  ;;  %v1292_v20 = vld [vmem:[%s2337_s2 + $0x168] sm:$0xff] }
  0x4b   : > { %521 = vmatpush.msrb.mxu0 %v1242_v22  ;;  %v1291_v22 = vld [vmem:[%s2337_s2 + $0x160] sm:$0xff] }
  0x4d   : > { %522 = vmatpush.msrb.mxu0 %v1241_v24  ;;  %v1290_v24 = vld [vmem:[%s2337_s2 + $0x158] sm:$0xff] }
  0x4f   : > { %523 = vmatpush.msrb.mxu0 %v1240_v26 }
  0x51   : > { %524 = vmatpush.msrb.mxu0 %v1239_v28 }
  0x53   : > { %525 = vmatpush.msrb.mxu0 %v1238_v29 }
  0x54   : > { %526 = vmatmul.f32.vlgmr.msrb.gmra.mxu0 %v1707_v32 }
  0xb0   : > { %v336_v33 = vpop.f32.mrf.mxu1 }
  0xb1   : > { %1219 = vmatpush.xpose.msk.msra.mxu3 %vm375_vm0, %v336_v33  ;;  %v300_v34 = vpop.f32.mrf.mxu0 }
  0xb4   : > { %1220 = vmatmul.msk.f32.vlgmr.msra.gmra.mxu3 %vm375_vm0, %v300_v34 }
  0xc0   : > { %v372_v63 = vpop.f32.mrf.mxu2 }
  0xc1   : > { %447 = vmatpush.msrb.mxu3 %v372_v63  ;;  %v1257_v63 = vld [vmem:[%s2339_s4 + $0x98] sm:$0xff] }
  0xc3   : > { %473 = vmatpush.msra.mxu3 %v1237_v62  ;;  %v1258_v62 = vld [vmem:[%s2339_s4 + $0xa0] sm:$0xff] }
  0xc5   : > { %474 = vmatpush.msra.mxu3 %v1236_v0  ;;  %v1256_v0 = vld [vmem:[%s2339_s4 + $0x90] sm:$0xff] }
  0xc7   : > { %475 = vmatpush.msra.mxu3 %v1235_v1  ;;  %v1255_v1 = vld [vmem:[%s2339_s4 + $0x88] sm:$0xff] }
  0xc9   : > { %476 = vmatpush.msra.mxu3 %v1234_v3 }
  0xcb   : > { %477 = vmatpush.msra.mxu3 %v1233_v5 }
  0xcd   : > { %478 = vmatpush.msra.mxu3 %v1232_v7 }
  0xcf   : > { %479 = vmatpush.msra.mxu3 %v1231_v9  ;;  %v455_v9 = vld [vmem:[%s2340_s5 + $0x18] sm:$0xff] }
  0xd1   : > { %480 = vmatpush.msra.mxu3 %v1230_v11  ;;  %v527_v43 = vpop.f32.mrf.mxu0  ;;  %v453_v11 = vld [vmem:[%s2340_s5 + $0x8] sm:$0xff] }
  0xd2   : > { %1270 = vmatpush.xpose.msk.msrb.mxu2 %vm375_vm0, %v527_v43  ;;  %v1308_v43 = vld [vmem:[%s2338_s3 + $0x168] sm:$0xff] }
  0xd3   : > { %481 = vmatpush.msra.mxu3 %v1229_v13  ;;  %v1276_v13 = vld [vmem:[%s2340_s5 + $0x38] sm:$0xff] }
  0xd5   : > { %482 = vmatpush.msra.mxu3 %v1228_v15  ;;  %v1274_v15 = vld [vmem:[%s2340_s5 + $0x28] sm:$0xff] }
  0xd7   : > { %483 = vmatpush.msra.mxu3 %v1227_v17  ;;  %v1273_v17 = vld [vmem:[%s2340_s5 + $0x20] sm:$0xff] }
  0xd9   : > { %484 = vmatpush.msra.mxu3 %v1226_v19  ;;  %v1293_v19 = vld [vmem:[%s2337_s2 + $0x170] sm:$0xff] }
  0xdb   : > { %485 = vmatpush.msra.mxu3 %v1225_v21 }
  0xdd   : > { %486 = vmatpush.msra.mxu3 %v1224_v23 }
  0xdf   : > { %487 = vmatpush.msra.mxu3 %v1223_v25 }
  0xe1   : > { %488 = vmatpush.msra.mxu3 %v1222_v27  ;;  %v1289_v27 = vld [vmem:[%s2337_s2 + $0x150] sm:$0xff] }
 0x137   : > { %v399_v51 = vpop.f32.mrf.mxu3 }
 0x138   : > { %v402_v52 = vmul.f32 0.17677669, %v399_v51  ;;  %v1265_v51 = vld [vmem:[%s2339_s4 + $0xd8] sm:$0xff] }
 0x139   : > { %551 = vmatpush.msrb.mxu1 %v1265_v51  ;;  %v1302_v51 = vld [vmem:[%s2338_s3 + $0x138] sm:$0xff] }
 0x13a   : > { %v403_v54 = vsel %vm266_vm1, -1e+10, %v402_v52  ;;  %v1264_v52 = vld [vmem:[%s2339_s4 + $0xd0] sm:$0xff] }
 0x13b   : > { %v405_v55 = vsel %vm404_vm2, %v403_v54, -inf  ;;  %552 = vmatpush.msrb.mxu1 %v1264_v52  ;;  %v1300_v52 = vld [vmem:[%s2338_s3 + $0x128] sm:$0xff] }
 0x13c   : > { %406 = vmax.xlane.f32.xlu0 %v405_v55 }
 0x13d   : > { %553 = vmatpush.msrb.mxu1 %v1263_v53  ;;  %v1299_v53 = vld [vmem:[%s2338_s3 + $0x120] sm:$0xff] }
 0x1af   : > { %v407_v57 = vpop.xlane.xlu0 %406 }
 0x1b0   : > { %v408_v58 = vsub.f32 %v403_v54, %v407_v57 }
 0x1b2   : > { %v409_v59 = vmul.f32 1.442695, %v408_v58  ;;  %v1262_v58 = vld [vmem:[%s2339_s4 + $0xc0] sm:$0xff] }
 0x1b3   : > { %554 = vmatpush.msrb.mxu1 %v1262_v58  ;;  %v1296_v58 = vld [vmem:[%s2338_s3 + $0x108] sm:$0xff] }
 0x1b4   : > { %1434 = vpow2.f32 %v409_v59  ;;  %v1261_v59 = vld [vmem:[%s2339_s4 + $0xb8] sm:$0xff] }
 0x1b5   : > { %555 = vmatpush.msrb.mxu1 %v1261_v59  ;;  %v1281_v59 = vld [vmem:[%s2337_s2 + $0x110] sm:$0xff] }
 0x1ba   : > { %v1776_v60 = vpop.eup %1434 }
 0x1bb   : > { %v411_v61 = vsel %vm404_vm2, %v1776_v60, 0.0 }
 0x1bc   : > { %412 = vadd.xlane.f32.xlu0 %v411_v61  ;;  %v1259_v61 = vld [vmem:[%s2339_s4 + $0xa8] sm:$0xff] }
 0x22f   : > { %v413_v30 = vpop.xlane.xlu0 %412 }
 0x230   : > { %1436 = vrcp.f32 %v413_v30  ;;  %v425_v35 = vand.u32 2147483648, %v413_v30  ;;  %v423_v37 = vand.u32 2147483647, %v413_v30  ;;  %vm419_vm4 = vweird.f32 %v413_v30 }
 0x232   : > { %v426_v39 = vor.u32 1.1754944e-38, %v425_v35  ;;  %vm424_vm6 = vcmp.eq.f32.partialorder %v423_v37, 8.507059e+37  ;;  %v1286_v37 = vld [vmem:[%s2337_s2 + $0x138] sm:$0xff] }
 0x236   : > { %v1437_v31 = vpop.eup %1436 }
 0x237   : > { %v415_v33 = vmul.f32 %v1437_v31, %v413_v30  ;;  %vm420_vm3 = vweird.f32 %v1437_v31  ;;  %v1288_v30 = vld [vmem:[%s2337_s2 + $0x148] sm:$0xff] }
 0x238   : > { %vm421_vm5 = vmor %vm419_vm4, %vm420_vm3 }
 0x239   : > { %v416_v34 = vsub.f32 1.0, %v415_v33 }
 0x23b   : > { %v417_v36 = vmul.f32 %v1437_v31, %v416_v34  ;;  %v1287_v34 = vld [vmem:[%s2337_s2 + $0x140] sm:$0xff] }
 0x23d   : > { %v418_v38 = vadd.f32 %v1437_v31, %v417_v36 }
 0x23f   : > { %v422_v40 = vsel %vm421_vm5, %v1437_v31, %v418_v38 }
 0x240   : > { %v427_v41 = vsel %vm424_vm6, %v426_v39, %v422_v40  ;;  %v1310_v39 = vld [vmem:[%s2338_s3 + $0x178] sm:$0xff]  ;;  %v1285_v40 = vld [vmem:[%s2337_s2 + $0x130] sm:$0xff] }
 0x241   : > { %v428_v42 = vmul.f32 %v1776_v60, %v427_v41  ;;  %v1260_v60 = vld [vmem:[%s2339_s4 + $0xb0] sm:$0xff] }
 0x242   : > { %556 = vmatpush.msrb.mxu1 %v1260_v60  ;;  %v1309_v41 = vld [vmem:[%s2338_s3 + $0x170] sm:$0xff]  ;;  %v1295_v60 = vld [vmem:[%s2338_s3 + $0x100] sm:$0xff] }
 0x243   : > { %1221 = vmatmul.msk.f32.vlgmr.msrb.gmra.mxu3 %vm404_vm2, %v428_v42  ;;  %v1284_v42 = vld [vmem:[%s2337_s2 + $0x128] sm:$0xff] }
 0x244   : > { %557 = vmatpush.msrb.mxu1 %v1259_v61  ;;  %662 = vmatpush.msrb.mxu3 %v1276_v13  ;;  %v1280_v61 = vld [vmem:[%s2337_s2 + $0x108] sm:$0xff] }
 0x246   : > { %558 = vmatpush.msrb.mxu1 %v1258_v62  ;;  %663 = vmatpush.msrb.mxu3 %v1275_v14  ;;  %v1279_v62 = vld [vmem:[%s2337_s2 + $0x100] sm:$0xff] }
 0x248   : > { %559 = vmatpush.msrb.mxu1 %v1257_v63  ;;  %664 = vmatpush.msrb.mxu3 %v1274_v15 }
 0x24a   : > { %560 = vmatpush.msrb.mxu1 %v1256_v0  ;;  %665 = vmatpush.msrb.mxu3 %v1273_v17  ;;  %v1318_v17 = vld [vmem:[%s2339_s4 + $0x138] sm:$0xff] }
 0x24b   : > { %489 = vmatmul.f32.vlgmr.msra.gmra.mxu3 %v1707_v32 }
 0x24c   : > { %561 = vmatpush.msrb.mxu1 %v1255_v1  ;;  %710 = vmatpush.msra.mxu3 %v1294_v18  ;;  %v1317_v18 = vld [vmem:[%s2339_s4 + $0x130] sm:$0xff] }
 0x24e   : > { %562 = vmatpush.msrb.mxu1 %v1254_v2  ;;  %711 = vmatpush.msra.mxu3 %v1293_v19  ;;  %v1316_v19 = vld [vmem:[%s2339_s4 + $0x128] sm:$0xff] }
 0x24f   : > { %563 = vmatmul.f32.vlgmr.msrb.gmra.mxu1 %v1707_v32 }
 0x250   : > { %712 = vmatpush.msra.mxu3 %v1292_v20  ;;  %v1315_v20 = vld [vmem:[%s2339_s4 + $0x120] sm:$0xff] }
 0x252   : > { %713 = vmatpush.msra.mxu3 %v1291_v22  ;;  %v1313_v22 = vld [vmem:[%s2339_s4 + $0x110] sm:$0xff] }
 0x254   : > { %714 = vmatpush.msra.mxu3 %v1290_v24  ;;  %v1311_v24 = vld [vmem:[%s2339_s4 + $0x100] sm:$0xff] }
 0x256   : > { %715 = vmatpush.msra.mxu3 %v1289_v27 }
 0x258   : > { %716 = vmatpush.msra.mxu3 %v1288_v30 }
 0x25a   : > { %717 = vmatpush.msra.mxu3 %v1287_v34  ;;  %v1350_v34 = vld [vmem:[%s2337_s2 + $0x1f8] sm:$0xff] }
 0x25c   : > { %718 = vmatpush.msra.mxu3 %v1286_v37  ;;  %v1348_v37 = vld [vmem:[%s2337_s2 + $0x1e8] sm:$0xff] }
 0x25e   : > { %719 = vmatpush.msra.mxu3 %v1285_v40  ;;  %v1346_v40 = vld [vmem:[%s2337_s2 + $0x1d8] sm:$0xff] }
 0x260   : > { %720 = vmatpush.msra.mxu3 %v1284_v42  ;;  %v1344_v42 = vld [vmem:[%s2337_s2 + $0x1c8] sm:$0xff] }
 0x2c6   : > { %v1878_v44 = vpop.f32.mrf.mxu3 }
 0x2cc   : > { %v564_v8 = vpop.f32.mrf.mxu1 }
 0x2cd   : > { %637 = vmatpush.msra.mxu2 %v564_v8  ;;  %v1323_v8 = vld [vmem:[%s2339_s4 + $0x160] sm:$0xff] }
 0x2ce   : > { %v490_v45 = vpop.f32.mrf.mxu3 }
 0x2cf   : > { %1271 = vmatmul.msk.f32.vlgmr.msrb.gmra.mxu2 %vm375_vm0, %v490_v45  ;;  %v1307_v45 = vld [vmem:[%s2338_s3 + $0x160] sm:$0xff] }
 0x2d0   : > { %685 = vmatpush.msrb.mxu2 %v455_v9  ;;  %v1322_v9 = vld [vmem:[%s2339_s4 + $0x158] sm:$0xff] }
 0x2d2   : > { %686 = vmatpush.msrb.mxu2 %v454_v10  ;;  %v1321_v10 = vld [vmem:[%s2339_s4 + $0x150] sm:$0xff] }
 0x2d4   : > { %687 = vmatpush.msrb.mxu2 %v453_v11  ;;  %v1320_v11 = vld [vmem:[%s2339_s4 + $0x148] sm:$0xff] }
 0x2d6   : > { %688 = vmatpush.msrb.mxu2 %v452_v12 }
 0x352   : > { %v590_v54 = vpop.f32.mrf.mxu2 }
 0x353   : > { %v593_v55 = vmul.f32 0.17677669, %v590_v54  ;;  %v1298_v54 = vld [vmem:[%s2338_s3 + $0x118] sm:$0xff] }
 0x355   : > { %v594_v56 = vsel %vm266_vm1, -1e+10, %v593_v55  ;;  %v1283_v55 = vld [vmem:[%s2337_s2 + $0x120] sm:$0xff] }
 0x356   : > { %v595_v57 = vsel %vm404_vm2, %v594_v56, -inf  ;;  %721 = vmatpush.msra.mxu3 %v1283_v55 }
 0x357   : > { %596 = vmax.xlane.f32.xlu1 %v595_v57  ;;  %v1282_v57 = vld [vmem:[%s2337_s2 + $0x118] sm:$0xff] }
 0x358   : > { %722 = vmatpush.msra.mxu3 %v1282_v57 }
 0x35a   : > { %723 = vmatpush.msra.mxu3 %v1281_v59 }
 0x35c   : > { %724 = vmatpush.msra.mxu3 %v1280_v61 }
 0x35e   : > { %725 = vmatpush.msra.mxu3 %v1279_v62  ;;  %v1366_v62 = vld [vmem:[%s2338_s3 + $0x1f8] sm:$0xff] }
 0x3ca   : > { %v597_v3 = vpop.xlane.xlu1 %596 }
 0x3cb   : > { %v598_v4 = vsub.f32 %v594_v56, %v597_v3  ;;  %v1297_v56 = vld [vmem:[%s2338_s3 + $0x110] sm:$0xff] }
 0x3cd   : > { %v599_v5 = vmul.f32 1.442695, %v598_v4 }
 0x3cf   : > { %1438 = vpow2.f32 %v599_v5  ;;  %v1326_v5 = vld [vmem:[%s2339_s4 + $0x178] sm:$0xff] }
 0x3d0   : > { %784 = vmatpush.msra.mxu0 %v1326_v5  ;;  %v1360_v5 = vld [vmem:[%s2338_s3 + $0x1c8] sm:$0xff] }
 0x3d5   : > { %v1439_v6 = vpop.eup %1438 }
 0x3d6   : > { %v601_v7 = vsel %vm404_vm2, %v1439_v6, 0.0 }
 0x3d7   : > { %602 = vadd.xlane.f32.xlu1 %v601_v7  ;;  %v1324_v7 = vld [vmem:[%s2339_s4 + $0x168] sm:$0xff] }
 0x44a   : > { %v603_v16 = vpop.xlane.xlu1 %602 }
 0x44b   : > { %1440 = vrcp.f32 %v603_v16  ;;  %v615_v26 = vand.u32 2147483648, %v603_v16  ;;  %v613_v29 = vand.u32 2147483647, %v603_v16  ;;  %vm609_vm8 = vweird.f32 %v603_v16 }
 0x44d   : > { %v616_v33 = vor.u32 1.1754944e-38, %v615_v26  ;;  %vm614_vm10 = vcmp.eq.f32.partialorder %v613_v29, 8.507059e+37 }
 0x451   : > { %v1441_v21 = vpop.eup %1440 }
 0x452   : > { %v605_v23 = vmul.f32 %v1441_v21, %v603_v16  ;;  %vm610_vm7 = vweird.f32 %v1441_v21  ;;  %v1319_v16 = vld [vmem:[%s2339_s4 + $0x140] sm:$0xff] }
 0x453   : > { %vm611_vm9 = vmor %vm609_vm8, %vm610_vm7 }
 0x454   : > { %v606_v25 = vsub.f32 1.0, %v605_v23  ;;  %v1312_v23 = vld [vmem:[%s2339_s4 + $0x108] sm:$0xff] }
 0x456   : > { %v607_v28 = vmul.f32 %v1441_v21, %v606_v25 }
 0x458   : > { %v608_v31 = vadd.f32 %v1441_v21, %v607_v28 }
 0x45a   : > { %v612_v35 = vsel %vm611_vm9, %v1441_v21, %v608_v31  ;;  %v1314_v21 = vld [vmem:[%s2339_s4 + $0x118] sm:$0xff] }
 0x45b   : > { %v617_v36 = vsel %vm614_vm10, %v616_v33, %v612_v35  ;;  %v1333_v31 = vld [vmem:[%s2340_s5 + $0x58] sm:$0xff]  ;;  %v1332_v33 = vld [vmem:[%s2340_s5 + $0x50] sm:$0xff] }
 0x45c   : > { %v618_v38 = vmul.f32 %v1439_v6, %v617_v36  ;;  %v1325_v6 = vld [vmem:[%s2339_s4 + $0x170] sm:$0xff]  ;;  %v1331_v36 = vld [vmem:[%s2340_s5 + $0x48] sm:$0xff] }
 0x45d   : > { %785 = vmatpush.msra.mxu0 %v1325_v6  ;;  %v1349_v35 = vld [vmem:[%s2337_s2 + $0x1f0] sm:$0xff]  ;;  %v1359_v6 = vld [vmem:[%s2338_s3 + $0x1c0] sm:$0xff] }
 0x45e   : > { %1272 = vmatmul.msk.f32.vlgmr.msra.gmra.mxu2 %vm404_vm2, %v618_v38  ;;  %v1330_v38 = vld [vmem:[%s2340_s5 + $0x40] sm:$0xff] }
 0x45f   : > { %747 = vmatpush.msra.mxu2 %v1310_v39  ;;  %786 = vmatpush.msra.mxu0 %v1324_v7  ;;  %v1347_v39 = vld [vmem:[%s2337_s2 + $0x1e0] sm:$0xff]  ;;  %v1358_v7 = vld [vmem:[%s2338_s3 + $0x1b8] sm:$0xff] }
 0x461   : > { %748 = vmatpush.msra.mxu2 %v1309_v41  ;;  %787 = vmatpush.msra.mxu0 %v1323_v8  ;;  %v1345_v41 = vld [vmem:[%s2337_s2 + $0x1d0] sm:$0xff] }
 0x462   : > { %v1357_v8 = vld [vmem:[%s2338_s3 + $0x1b0] sm:$0xff] }
 0x463   : > { %749 = vmatpush.msra.mxu2 %v1308_v43  ;;  %788 = vmatpush.msra.mxu0 %v1322_v9  ;;  %v1356_v9 = vld [vmem:[%s2338_s3 + $0x1a8] sm:$0xff] }
 0x465   : > { %750 = vmatpush.msra.mxu2 %v1307_v45  ;;  %789 = vmatpush.msra.mxu0 %v1321_v10  ;;  %v1343_v45 = vld [vmem:[%s2337_s2 + $0x1c0] sm:$0xff] }
 0x466   : > { %1278 = vmatmul.msk.f32.vlgmr.msrb.gmra.mxu2 %vm375_vm0, %v1878_v44  ;;  %v1301_v44 = vld [vmem:[%s2338_s3 + $0x130] sm:$0xff]  ;;  %v1355_v10 = vld [vmem:[%s2338_s3 + $0x1a0] sm:$0xff] }
 0x467   : > { %751 = vmatpush.msra.mxu2 %v1306_v46  ;;  %790 = vmatpush.msra.mxu0 %v1320_v11  ;;  %v1342_v46 = vld [vmem:[%s2337_s2 + $0x1b8] sm:$0xff]  ;;  %v1337_v11 = vld [vmem:[%s2337_s2 + $0x190] sm:$0xff] }
 0x469   : > { %752 = vmatpush.msra.mxu2 %v1305_v47  ;;  %791 = vmatpush.msra.mxu0 %v1319_v16  ;;  %v1341_v47 = vld [vmem:[%s2337_s2 + $0x1b0] sm:$0xff]  ;;  %v1352_v16 = vld [vmem:[%s2338_s3 + $0x188] sm:$0xff] }
 0x46b   : > { %753 = vmatpush.msra.mxu2 %v1304_v49  ;;  %792 = vmatpush.msra.mxu0 %v1318_v17  ;;  %v1351_v17 = vld [vmem:[%s2338_s3 + $0x180] sm:$0xff] }
 0x46d   : > { %754 = vmatpush.msra.mxu2 %v1303_v50  ;;  %793 = vmatpush.msra.mxu0 %v1317_v18  ;;  %v1340_v50 = vld [vmem:[%s2337_s2 + $0x1a8] sm:$0xff] }
 0x46f   : > { %755 = vmatpush.msra.mxu2 %v1302_v51  ;;  %794 = vmatpush.msra.mxu0 %v1316_v19 }
 0x471   : > { %756 = vmatpush.msra.mxu2 %v1301_v44  ;;  %795 = vmatpush.msra.mxu0 %v1315_v20  ;;  %v1339_v44 = vld [vmem:[%s2337_s2 + $0x1a0] sm:$0xff] }
 0x473   : > { %757 = vmatpush.msra.mxu2 %v1300_v52  ;;  %796 = vmatpush.msra.mxu0 %v1314_v21 }
 0x475   : > { %758 = vmatpush.msra.mxu2 %v1299_v53  ;;  %797 = vmatpush.msra.mxu0 %v1313_v22 }
 0x477   : > { %759 = vmatpush.msra.mxu2 %v1298_v54  ;;  %798 = vmatpush.msra.mxu0 %v1312_v23  ;;  %v1338_v54 = vld [vmem:[%s2337_s2 + $0x198] sm:$0xff] }
 0x478   : > { %v1382_v23 = vld [vmem:[%s2339_s4 + $0x1f8] sm:$0xff] }
 0x479   : > { %760 = vmatpush.msra.mxu2 %v1297_v56  ;;  %799 = vmatpush.msra.mxu0 %v1311_v24  ;;  %v1381_v24 = vld [vmem:[%s2339_s4 + $0x1f0] sm:$0xff] }
 0x47a   : > { %800 = vmatmul.f32.vlgmr.msra.gmra.mxu0 %v1707_v32 }
 0x47b   : > { %761 = vmatpush.msra.mxu2 %v1296_v58 }
 0x47d   : > { %762 = vmatpush.msra.mxu2 %v1295_v60 }
 0x47e   : > { %763 = vmatmul.f32.vlgmr.msra.gmra.mxu2 %v1707_v32 }
 0x47f   : > { %999 = vmatpush.msrb.mxu2 %v1382_v23 }
 0x481   : > { %1000 = vmatpush.msrb.mxu2 %v1381_v24 }
 0x4e1   : > { %v639_v63 = vpop.f32.mrf.mxu2 }
 0x4e2   : > { %1277 = vmatmul.msk.f32.vlgmr.msrb.gmra.mxu3 %vm375_vm0, %v639_v63  ;;  %v1365_v63 = vld [vmem:[%s2338_s3 + $0x1f0] sm:$0xff] }
 0x4e3   : > { %925 = vmatpush.msrb.mxu3 %v1350_v34 }
 0x4e5   : > { %926 = vmatpush.msrb.mxu3 %v1349_v35 }
 0x4e7   : > { %927 = vmatpush.msrb.mxu3 %v1348_v37  ;;  %v1372_v37 = vld [vmem:[%s2339_s4 + $0x1a8] sm:$0xff] }
 0x4e9   : > { %v690_v0 = vpop.f32.mrf.mxu2  ;;  %928 = vmatpush.msrb.mxu3 %v1347_v39  ;;  %v1370_v39 = vld [vmem:[%s2339_s4 + $0x198] sm:$0xff] }
 0x4ea   : > { %726 = vmatmul.f32.vlgmr.msra.gmra.mxu3 %v1707_v32 }
 0x4eb   : > { %929 = vmatpush.msrb.mxu3 %v1346_v40  ;;  %v1368_v40 = vld [vmem:[%s2339_s4 + $0x188] sm:$0xff] }
 0x4ed   : > { %930 = vmatpush.msrb.mxu3 %v1345_v41  ;;  %v1367_v41 = vld [vmem:[%s2339_s4 + $0x180] sm:$0xff] }
 0x4ef   : > { %931 = vmatpush.msrb.mxu3 %v1344_v42 }
 0x4f1   : > { %932 = vmatpush.msrb.mxu3 %v1343_v45 }
 0x4f3   : > { %933 = vmatpush.msrb.mxu3 %v1342_v46 }
 0x4f5   : > { %934 = vmatpush.msrb.mxu3 %v1341_v47 }
 0x4f7   : > { %v801_v30 = vpop.f32.mrf.mxu0  ;;  %935 = vmatpush.msrb.mxu3 %v1340_v50  ;;  %v1389_v50 = vld [vmem:[%s2340_s5 + $0x78] sm:$0xff] }
 0x4f9   : > { %936 = vmatpush.msrb.mxu3 %v1339_v44 }
 0x4fb   : > { %937 = vmatpush.msrb.mxu3 %v1338_v54 }
 0x4fd   : > { %938 = vmatpush.msrb.mxu3 %v1337_v11 }
 0x501   : > { %v764_v1 = vpop.f32.mrf.mxu2 }
 0x502   : > { %1327 = vmatpush.xpose.msk.msra.mxu1 %vm375_vm0, %v764_v1  ;;  %v1363_v1 = vld [vmem:[%s2338_s3 + $0x1e0] sm:$0xff] }
 0x506   : > { %874 = vmatpush.msrb.mxu1 %v801_v30  ;;  %v1374_v30 = vld [vmem:[%s2339_s4 + $0x1b8] sm:$0xff] }
 0x565   : > { %v667_v2 = vpop.f32.mrf.mxu3 }
 0x566   : > { %v2061_v3 = vadd.f32 %v690_v0, %v667_v2  ;;  %v1364_v0 = vld [vmem:[%s2338_s3 + $0x1e8] sm:$0xff]  ;;  %v1362_v2 = vld [vmem:[%s2338_s3 + $0x1d8] sm:$0xff] }
 0x56d   : > { %v727_v4 = vpop.f32.mrf.mxu3 }
 0x56e   : > { %1328 = vmatmul.msk.f32.vlgmr.msra.gmra.mxu1 %vm375_vm0, %v727_v4  ;;  %v1361_v4 = vld [vmem:[%s2338_s3 + $0x1d0] sm:$0xff] }
 0x56f   : > { %899 = vmatpush.msra.mxu1 %v1333_v31  ;;  %v1373_v31 = vld [vmem:[%s2339_s4 + $0x1b0] sm:$0xff] }
 0x571   : > { %900 = vmatpush.msra.mxu1 %v1332_v33 }
 0x573   : > { %901 = vmatpush.msra.mxu1 %v1331_v36 }
 0x575   : > { %902 = vmatpush.msra.mxu1 %v1330_v38  ;;  %v1371_v38 = vld [vmem:[%s2339_s4 + $0x1a0] sm:$0xff] }
 0x5eb   : > { %v827_v12 = vpop.f32.mrf.mxu1 }
 0x5ec   : > { %v830_v13 = vmul.f32 0.17677669, %v827_v12  ;;  %v1354_v12 = vld [vmem:[%s2338_s3 + $0x198] sm:$0xff] }
 0x5ee   : > { %v831_v14 = vsel %vm266_vm1, -1e+10, %v830_v13  ;;  %v1336_v13 = vld [vmem:[%s2337_s2 + $0x188] sm:$0xff] }
 0x5ef   : > { %v832_v15 = vsel %vm404_vm2, %v831_v14, -inf  ;;  %939 = vmatpush.msrb.mxu3 %v1336_v13 }
 0x5f0   : > { %833 = vmax.xlane.f32.xlu2 %v832_v15  ;;  %v1335_v15 = vld [vmem:[%s2337_s2 + $0x180] sm:$0xff] }
 0x5f1   : > { %940 = vmatpush.msrb.mxu3 %v1335_v15 }
 0x5f2   : > { %941 = vmatmul.f32.vlgmr.msrb.gmra.mxu3 %v1707_v32 }
 0x663   : > { %v834_v25 = vpop.xlane.xlu2 %833 }
 0x664   : > { %v835_v26 = vsub.f32 %v831_v14, %v834_v25  ;;  %v1353_v14 = vld [vmem:[%s2338_s3 + $0x190] sm:$0xff]  ;;  %v1379_v25 = vld [vmem:[%s2339_s4 + $0x1e0] sm:$0xff] }
 0x666   : > { %v836_v27 = vmul.f32 1.442695, %v835_v26  ;;  %v1378_v26 = vld [vmem:[%s2339_s4 + $0x1d8] sm:$0xff] }
 0x668   : > { %1442 = vpow2.f32 %v836_v27  ;;  %v1377_v27 = vld [vmem:[%s2339_s4 + $0x1d0] sm:$0xff] }
 0x66e   : > { %v1443_v28 = vpop.eup %1442 }
 0x66f   : > { %v838_v29 = vsel %vm404_vm2, %v1443_v28, 0.0 }
 0x670   : > { %839 = vadd.xlane.f32.xlu2 %v838_v29  ;;  %v1375_v29 = vld [vmem:[%s2339_s4 + $0x1c0] sm:$0xff] }
 0x675   : > { %v942_v22 = vpop.f32.mrf.mxu3 }
 0x6e3   : > { %v840_v43 = vpop.xlane.xlu2 %839 }
 0x6e4   : > { %1444 = vrcp.f32 %v840_v43  ;;  %v852_v53 = vand.u32 2147483648, %v840_v43  ;;  %v850_v56 = vand.u32 2147483647, %v840_v43  ;;  %vm846_vm12 = vweird.f32 %v840_v43 }
 0x6e6   : > { %v853_v58 = vor.u32 1.1754944e-38, %v852_v53  ;;  %vm851_vm14 = vcmp.eq.f32.partialorder %v850_v56, 8.507059e+37 }
 0x6ea   : > { %v1445_v49 = vpop.eup %1444 }
 0x6eb   : > { %v842_v51 = vmul.f32 %v1445_v49, %v840_v43  ;;  %vm847_vm11 = vweird.f32 %v1445_v49 }
 0x6ec   : > { %vm848_vm13 = vmor %vm846_vm12, %vm847_vm11 }
 0x6ed   : > { %v843_v52 = vsub.f32 1.0, %v842_v51  ;;  %v1388_v51 = vld [vmem:[%s2340_s5 + $0x70] sm:$0xff] }
 0x6ef   : > { %v844_v55 = vmul.f32 %v1445_v49, %v843_v52 }
 0x6f1   : > { %v845_v57 = vadd.f32 %v1445_v49, %v844_v55 }
 0x6f3   : > { %v849_v59 = vsel %vm848_vm13, %v1445_v49, %v845_v57 }
 0x6f4   : > { %v854_v60 = vsel %vm851_vm14, %v853_v58, %v849_v59 }
 0x6f5   : > { %v855_v61 = vmul.f32 %v1443_v28, %v854_v60  ;;  %v1376_v28 = vld [vmem:[%s2339_s4 + $0x1c8] sm:$0xff] }
 0x6f7   : > { %1329 = vmatmul.msk.f32.vlgmr.msrb.gmra.mxu1 %vm404_vm2, %v855_v61 }
 0x6f8   : > { %962 = vmatpush.msrb.mxu1 %v1366_v62 }
 0x6fa   : > { %963 = vmatpush.msrb.mxu1 %v1365_v63  ;;  %v1386_v63 = vld [vmem:[%s2340_s5 + $0x60] sm:$0xff] }
 0x6fc   : > { %964 = vmatpush.msrb.mxu1 %v1364_v0 }
 0x6fe   : > { %965 = vmatpush.msrb.mxu1 %v1363_v1 }
 0x700   : > { %966 = vmatpush.msrb.mxu1 %v1362_v2 }
 0x702   : > { %967 = vmatpush.msrb.mxu1 %v1361_v4  ;;  %v1450_v4 = vld [vmem:[%s1698_s14] sm:$0xff] }
 0x704   : > { %968 = vmatpush.msrb.mxu1 %v1360_v5 }
 0x706   : > { %969 = vmatpush.msrb.mxu1 %v1359_v6 }
 0x708   : > { %970 = vmatpush.msrb.mxu1 %v1358_v7 }
 0x70a   : > { %971 = vmatpush.msrb.mxu1 %v1357_v8 }
 0x70c   : > { %972 = vmatpush.msrb.mxu1 %v1356_v9 }
 0x70e   : > { %973 = vmatpush.msrb.mxu1 %v1355_v10 }
 0x710   : > { %974 = vmatpush.msrb.mxu1 %v1354_v12 }
 0x712   : > { %975 = vmatpush.msrb.mxu1 %v1353_v14 }
 0x714   : > { %976 = vmatpush.msrb.mxu1 %v1352_v16 }
 0x716   : > { %977 = vmatpush.msrb.mxu1 %v1351_v17 }
 0x774   : > { %v876_v18 = vpop.f32.mrf.mxu1 }
 0x775   : > { %1334 = vmatmul.msk.f32.vlgmr.msra.gmra.mxu1 %vm375_vm0, %v876_v18 }
 0x77d   : > { %978 = vmatmul.f32.vlgmr.msrb.gmra.mxu1 %v1707_v32 }
 0x7f2   : > { %v904_v19 = vpop.f32.mrf.mxu1 }
 0x7f3   : > { %v2230_v20 = vadd.f32 %v904_v19, %v2061_v3  ;;  %v1380_v3 = vld [vmem:[%s2339_s4 + $0x1e8] sm:$0xff] }
 0x7f4   : > { %1001 = vmatpush.msrb.mxu2 %v1380_v3 }
 0x7f6   : > { %1002 = vmatpush.msrb.mxu2 %v1379_v25 }
 0x7f8   : > { %1003 = vmatpush.msrb.mxu2 %v1378_v26 }
 0x7fa   : > { %v979_v21 = vpop.f32.mrf.mxu1  ;;  %1004 = vmatpush.msrb.mxu2 %v1377_v27 }
 0x7fb   : > { %1383 = vmatpush.xpose.msk.msrb.mxu0 %vm375_vm0, %v979_v21 }
 0x7fc   : > { %1005 = vmatpush.msrb.mxu2 %v1376_v28 }
 0x7fe   : > { %1384 = vmatmul.msk.f32.vlgmr.msrb.gmra.mxu0 %vm375_vm0, %v942_v22  ;;  %1006 = vmatpush.msrb.mxu2 %v1375_v29 }
 0x800   : > { %1007 = vmatpush.msrb.mxu2 %v1374_v30 }
 0x802   : > { %1008 = vmatpush.msrb.mxu2 %v1373_v31 }
 0x804   : > { %1009 = vmatpush.msrb.mxu2 %v1372_v37 }
 0x806   : > { %1010 = vmatpush.msrb.mxu2 %v1371_v38 }
 0x808   : > { %1011 = vmatpush.msrb.mxu2 %v1370_v39 }
 0x80a   : > { %1012 = vmatpush.msrb.mxu2 %v1369_v48 }
 0x80c   : > { %1013 = vmatpush.msrb.mxu2 %v1368_v40 }
 0x80e   : > { %1014 = vmatpush.msrb.mxu2 %v1367_v41 }
 0x80f   : > { %1015 = vmatmul.f32.vlgmr.msrb.gmra.mxu2 %v1707_v32  ;;  %v1387_v32 = vld [vmem:[%s2340_s5 + $0x68] sm:$0xff] }
 0x87b   : > { %v1042_v33 = vpop.f32.mrf.mxu0 }
 0x87c   : > { %v1045_v34 = vmul.f32 0.17677669, %v1042_v33 }
 0x87e   : > { %v1046_v35 = vsel %vm266_vm1, -1e+10, %v1045_v34 }
 0x87f   : > { %v1047_v36 = vsel %vm404_vm2, %v1046_v35, -inf }
 0x880   : > { %1048 = vmax.xlane.f32.xlu0 %v1047_v36 }
 0x892   : > { %v1016_v49 = vpop.f32.mrf.mxu2 }
 0x893   : > { %1089 = vmatpush.msra.mxu0 %v1016_v49 }
 0x895   : > { %1114 = vmatpush.msrb.mxu0 %v1389_v50 }
 0x897   : > { %1115 = vmatpush.msrb.mxu0 %v1388_v51 }
 0x899   : > { %1116 = vmatpush.msrb.mxu0 %v1387_v32 }
 0x89b   : > { %1117 = vmatpush.msrb.mxu0 %v1386_v63 }
 0x8f3   : > { %v1049_v42 = vpop.xlane.xlu0 %1048 }
 0x8f4   : > { %v1050_v43 = vsub.f32 %v1046_v35, %v1049_v42 }
 0x8f6   : > { %v1051_v45 = vmul.f32 1.442695, %v1050_v43 }
 0x8f8   : > { %1446 = vpow2.f32 %v1051_v45 }
 0x8fe   : > { %v1447_v46 = vpop.eup %1446 }
 0x8ff   : > { %v1053_v47 = vsel %vm404_vm2, %v1447_v46, 0.0 }
 0x900   : > { %1054 = vadd.xlane.f32.xlu1 %v1053_v47 }
 0x973   : > { %v1055_v44 = vpop.xlane.xlu1 %1054 }
 0x974   : > { %1448 = vrcp.f32 %v1055_v44  ;;  %v1067_v55 = vand.u32 2147483648, %v1055_v44  ;;  %v1065_v57 = vand.u32 2147483647, %v1055_v44  ;;  %vm1061_vm1 = vweird.f32 %v1055_v44 }
 0x976   : > { %v1068_v59 = vor.u32 1.1754944e-38, %v1067_v55  ;;  %vm1066_vm4 = vcmp.eq.f32.partialorder %v1065_v57, 8.507059e+37 }
 0x97a   : > { %v1449_v52 = vpop.eup %1448 }
 0x97b   : > { %v1057_v53 = vmul.f32 %v1449_v52, %v1055_v44  ;;  %vm1062_vm15 = vweird.f32 %v1449_v52 }
 0x97c   : > { %vm1063_vm3 = vmor %vm1061_vm1, %vm1062_vm15 }
 0x97d   : > { %v1058_v54 = vsub.f32 1.0, %v1057_v53 }
 0x97f   : > { %v1059_v56 = vmul.f32 %v1449_v52, %v1058_v54 }
 0x981   : > { %v1060_v58 = vadd.f32 %v1449_v52, %v1059_v56 }
 0x983   : > { %v1064_v60 = vsel %vm1063_vm3, %v1449_v52, %v1060_v58 }
 0x984   : > { %v1069_v61 = vsel %vm1066_vm4, %v1068_v59, %v1064_v60 }
 0x985   : > { %v1070_v62 = vmul.f32 %v1447_v46, %v1069_v61 }
 0x987   : > { %1385 = vmatmul.msk.f32.vlgmr.msra.gmra.mxu0 %vm404_vm2, %v1070_v62 }
 0xa04   : > { %v1091_v0 = vpop.f32.mrf.mxu0 }
 0xa05   : > { %1390 = vmatmul.msk.f32.vlgmr.msrb.gmra.mxu0 %vm375_vm0, %v1091_v0 }
 0xa82   : > { %v1119_v1 = vpop.f32.mrf.mxu0 }
 0xa83   : > { %v1122_v2 = vadd.f32 %v1119_v1, %v2230_v20 }
 0xa85   : > { %v1123_v5 = vadd.f32 %v1450_v4, %v1122_v2 }
 0xa87   : > { %1124 = vst [vmem:[%s255_s26] sm:$0xff] %v1123_v5 }
 0xa88   : > { %1478 = shalt.err (!%p1475_p3)
}
 0xa89   : > { %1395 = dma.vmem_to_hbm [thread:$0]  (%p1588_p5), %s1139_s28, 128, %s1141_s9, %s1126_s10  }
 0xa8a PF: > { %p1401_p4 = scmp.ge.s32.totalorder %s1513_s24, 2  ;;  %s1152_s14 = sand.u32 1, %s1501_s21  }
 0xa8b   : > { %s1153_s29 = scalar_lea.sflag [#allocation3], %s1152_s14 }
 0xa8c   : > { %p1398_p7 = pnand %p1401_p4, %p1592_p6 }
 0xa8e   : > { %p1399_p8 = pneg %p1398_p7 }
 0xa90   : > { %1496 = dma.done.wait (%p1399_p8), %s1153_s29, 128  }
 0xa91   : > { %1498 = vsyncadd (%p1399_p8), %s1153_s29, 4294967168  ;;  %p16_p9 = scmp.ge.s32.totalorder %s1575_s27, 4   ;;  %s2344_s21 = smov %s1505_s22 }
 0xa92   : > { %s2345_s22 = smov %s1509_s23  ;;  %s2346_s23 = smov %s1586_s30 }
 0xa93   : > { %s2347_s24 = smov %s1575_s27  ;;  %18 = sbr.rel (!%p16_p9) target bundleno = 3 (0x3), region = 94 }
 0xa98   :  { %1159 = vsyncpa [#allocation3], 1 }
 0xa99   :  { %1161 = vsyncpa [#allocation3 + $0x1], 1 }

</bundles_post_ra>
